<compile_context>
chip_gen: v7x
topology: tpu7x:2x2x1
jax: 0.10.0
libtpu: 0.0.40
codegen_flags: <defaults>
</compile_context>

<pallas_src>
import functools

import numpy as np
import jax
import jax.numpy as jnp
from jax.experimental import pallas as pl
from jax.experimental.pallas import tpu as pltpu


# ---------------------------------------------------------------------------
# Wrapper-side weight preparation (plain JAX glue, weights only).
# ---------------------------------------------------------------------------
def _shift_selector(kw, wout):
    """sel[dx, k, w] = 1 iff k == w + dx  (band / Toeplitz selector)."""
    wp = wout + kw - 1
    sel = np.zeros((kw, wp, wout), np.float32)
    for dx in range(kw):
        for w in range(wout):
            sel[dx, w + dx, w] = 1.0
    return jnp.asarray(sel)


def make_band_conv3_weight(w, W):
    """(3,3,Cin,Cout) HWIO conv weight -> (3*(W+2)*Cin, W*Cout) band matrix."""
    Kh, Kw, Cin, Cout = w.shape
    sel = _shift_selector(Kw, W)                        # (Kw, W+2, W)
    band = jnp.einsum("dkw,ydio->ykiwo", sel, w)        # (Kh, W+2, Cin, W, Cout)
    return band.reshape(Kh * (W + Kw - 1) * Cin, W * Cout)


def make_band_sa_weight(sa_w, W):
    """(2,7,7) spatial-attention conv weight -> (2*7*(W+6), W) band matrix."""
    Cc, Kh, Kw = sa_w.shape
    sel = _shift_selector(Kw, W)                        # (7, W+6, W)
    band = jnp.einsum("dkw,cyd->cykw", sel, sa_w)       # (2, 7, W+6, W)
    return band.reshape(Cc * Kh * (W + Kw - 1), W)


def tile_bias(b, W):
    """(C,) -> (1, W*C) so it broadcasts over the flat (H, W*C) layout."""
    return jnp.tile(b.reshape(1, -1), (1, W))


# ---------------------------------------------------------------------------
# In-kernel helpers
# ---------------------------------------------------------------------------
def _sigmoid(z):
    # EUP exp + exact reciprocal (matches jax.nn.sigmoid numerics).
    return pl.reciprocal(1.0 + jnp.exp(-z), approx=False)


def _band_patch3(x_flat, H, W, C):
    """Zero-pad the (H, W*C) flat map by 1 pixel and build the (H, 3*(W+2)*C)
    band-conv patch (concat of 3 row-shifted slabs)."""
    zc = jnp.zeros((H, C), jnp.float32)
    xw = jnp.concatenate([zc, x_flat, zc], axis=1)               # (H, (W+2)*C)
    zr = jnp.zeros((1, (W + 2) * C), jnp.float32)
    xp = jnp.concatenate([zr, xw, zr], axis=0)                   # (H+2, (W+2)*C)
    return jnp.concatenate([xp[dy:dy + H, :] for dy in range(3)], axis=1)


# ---------------------------------------------------------------------------
# Fused RCSAB kernel (one grid step = one batch element, everything in VMEM).
# ---------------------------------------------------------------------------
def _rcsab_kernel(x_ref, w1_ref, b1_ref, w2_ref, b2_ref,
                  caw1_ref, cab1_ref, caw2_ref, cab2_ref,
                  w3_ref, b3_ref, sawt_ref, o_ref, *, H, W, C):
    inv_hw = 1.0 / float(H * W)
    x = x_ref[0]                                                 # (H, W*C)

    # conv1  (-> residual1)
    r1 = jnp.dot(_band_patch3(x, H, W, C), w1_ref[...],
                 preferred_element_type=jnp.float32) + b1_ref[...]
    # relu + conv2
    x2 = jnp.dot(_band_patch3(jnp.maximum(r1, 0.0), H, W, C), w2_ref[...],
                 preferred_element_type=jnp.float32) + b2_ref[...]

    # ---- channel attention (fused; no HBM round trip) ----
    colsum = jnp.sum(x2, axis=0, keepdims=True)                  # (1, W*C)
    gap = colsum[:, 0:C]
    for w in range(1, W):
        gap = gap + colsum[:, w * C:(w + 1) * C]
    gap = gap * inv_hw                                           # (1, C)
    h1 = jnp.maximum(
        jnp.dot(gap, caw1_ref[...], preferred_element_type=jnp.float32)
        + cab1_ref[...], 0.0)                                    # (1, Cr)
    a = _sigmoid(
        jnp.dot(h1, caw2_ref[...], preferred_element_type=jnp.float32)
        + cab2_ref[...])                                         # (1, C)
    a_rep = jnp.concatenate([a] * W, axis=1)                     # (1, W*C)
    x3 = x2 * a_rep

    # conv3  (-> residual2)
    x4 = jnp.dot(_band_patch3(x3, H, W, C), w3_ref[...],
                 preferred_element_type=jnp.float32) + b3_ref[...]

    # ---- spatial attention on s = x4 + r1 ----
    s = x4 + r1                                                  # (H, W*C)
    mean_cols, max_cols = [], []
    for w in range(W):
        chunk = s[:, w * C:(w + 1) * C]                          # (H, C)
        mean_cols.append(jnp.mean(chunk, axis=-1, keepdims=True))
        max_cols.append(jnp.max(chunk, axis=-1, keepdims=True))
    am_mean = jnp.concatenate(mean_cols, axis=1)                 # (H, W)
    am_max = jnp.concatenate(max_cols, axis=1)                   # (H, W)

    def pad3(m):                                                 # (H, W)->(H+6, W+6)
        zc = jnp.zeros((H, 3), jnp.float32)
        mw = jnp.concatenate([zc, m, zc], axis=1)
        zr = jnp.zeros((3, W + 6), jnp.float32)
        return jnp.concatenate([zr, mw, zr], axis=0)

    ap = (pad3(am_mean), pad3(am_max))
    patch = jnp.concatenate(
        [ap[c][dy:dy + H, :] for c in range(2) for dy in range(7)], axis=1)
    att = _sigmoid(jnp.dot(patch, sawt_ref[...],
                           preferred_element_type=jnp.float32))  # (H, W)
    att_rep = jnp.concatenate(
        [jnp.broadcast_to(att[:, w:w + 1], (H, C)) for w in range(W)], axis=1)

    o_ref[0] = att_rep * s + x4                                  # sa(s) + residual2


# ---------------------------------------------------------------------------
# Final conv + RG global residual (fused).
# ---------------------------------------------------------------------------
def _final_kernel(y_ref, x0_ref, w_ref, b_ref, o_ref, *, H, W, C):
    y = jnp.dot(_band_patch3(y_ref[0], H, W, C), w_ref[...],
                preferred_element_type=jnp.float32) + b_ref[...]
    o_ref[0] = y + x0_ref[0]


# ---------------------------------------------------------------------------
# pallas_call wrappers
# ---------------------------------------------------------------------------
def _const2d(shape):
    return pl.BlockSpec(shape, lambda i: (0, 0))


def rcsab_block(x_flat, bp, *, H, W, C):
    B = x_flat.shape[0]
    WC = W * C
    Kb = 3 * (W + 2) * C
    Ks = 2 * 7 * (W + 6)
    Cr = bp["ca_w1"].shape[-1]
    kernel = functools.partial(_rcsab_kernel, H=H, W=W, C=C)
    return pl.pallas_call(
        kernel,
        grid=(B,),
        in_specs=[
            pl.BlockSpec((1, H, WC), lambda i: (i, 0, 0)),
            _const2d((Kb, WC)), _const2d((1, WC)),     # conv1
            _const2d((Kb, WC)), _const2d((1, WC)),     # conv2
            _const2d((C, Cr)), _const2d((1, Cr)),      # CA fc1
            _const2d((Cr, C)), _const2d((1, C)),       # CA fc2
            _const2d((Kb, WC)), _const2d((1, WC)),     # conv3
            _const2d((Ks, W)),                         # SA band weights
        ],
        out_specs=pl.BlockSpec((1, H, WC), lambda i: (i, 0, 0)),
        out_shape=jax.ShapeDtypeStruct((B, H, WC), jnp.float32),
        compiler_params=pltpu.CompilerParams(dimension_semantics=("parallel",)),
    )(x_flat, bp["w1b"], bp["b1t"], bp["w2b"], bp["b2t"],
      bp["ca_w1"], bp["ca_b1r"], bp["ca_w2"], bp["ca_b2r"],
      bp["w3b"], bp["b3t"], bp["sa_wt"])


def final_conv_residual(y_flat, x0_flat, wb, bt, *, H, W, C):
    B = y_flat.shape[0]
    WC = W * C
    Kb = 3 * (W + 2) * C
    kernel = functools.partial(_final_kernel, H=H, W=W, C=C)
    return pl.pallas_call(
        kernel,
        grid=(B,),
        in_specs=[
            pl.BlockSpec((1, H, WC), lambda i: (i, 0, 0)),
            pl.BlockSpec((1, H, WC), lambda i: (i, 0, 0)),
            _const2d((Kb, WC)), _const2d((1, WC)),
        ],
        out_specs=pl.BlockSpec((1, H, WC), lambda i: (i, 0, 0)),
        out_shape=jax.ShapeDtypeStruct((B, H, WC), jnp.float32),
        compiler_params=pltpu.CompilerParams(dimension_semantics=("parallel",)),
    )(y_flat, x0_flat, wb, bt)


def prepare_block_params(p, W):
    return dict(
        w1b=make_band_conv3_weight(p["w1"], W), b1t=tile_bias(p["b1"], W),
        w2b=make_band_conv3_weight(p["w2"], W), b2t=tile_bias(p["b2"], W),
        ca_w1=p["ca_w1"], ca_b1r=p["ca_b1"].reshape(1, -1),
        ca_w2=p["ca_w2"], ca_b2r=p["ca_b2"].reshape(1, -1),
        w3b=make_band_conv3_weight(p["w3"], W), b3t=tile_bias(p["b3"], W),
        sa_wt=make_band_sa_weight(p["sa_w"], W),
    )


def rg_forward(x_nchw, params):
    B, C, H, W = x_nchw.shape
    x = jnp.transpose(x_nchw, (0, 2, 3, 1)).astype(jnp.float32)  # NCHW -> NHWC (glue)
    x_flat = x.reshape(B, H, W * C)                              # lane-dense layout
    y = x_flat
    for p in params["blocks"]:
        bp = prepare_block_params(p, W)
        y = rcsab_block(y, bp, H=H, W=W, C=C)
    wb = make_band_conv3_weight(params["final_w"], W)
    bt = tile_bias(params["final_b"], W)
    y = final_conv_residual(y, x_flat, wb, bt, H=H, W=W, C=C)    # conv + global residual
    return jnp.transpose(y.reshape(B, H, W, C), (0, 3, 1, 2))    # NHWC -> NCHW


# ---------------------------------------------------------------------------
# Pure-JAX reference (same math, NHWC) for correctness checking.
# ---------------------------------------------------------------------------
def _ref_conv3x3(x, w, b):
    y = jax.lax.conv_general_dilated(
        x, w, window_strides=(1, 1), padding=((1, 1), (1, 1)),
        dimension_numbers=("NHWC", "HWIO", "NHWC"))
    return y + b.reshape(1, 1, 1, -1)


def _ref_rcsab(x, p):
    r1 = _ref_conv3x3(x, p["w1"], p["b1"])
    x1 = _ref_conv3x3(jnp.maximum(r1, 0.0), p["w2"], p["b2"])
    gap = jnp.mean(x1, axis=(1, 2), keepdims=True)
    h = jnp.maximum(jnp.einsum("bijc,cr->bijr", gap, p["ca_w1"]) + p["ca_b1"], 0.0)
    z = jnp.einsum("bijr,rc->bijc", h, p["ca_w2"]) + p["ca_b2"]
    x1 = x1 * jax.nn.sigmoid(z)
    x1 = _ref_conv3x3(x1, p["w3"], p["b3"])
    s = x1 + r1
    am = jnp.stack([jnp.mean(s, axis=-1), jnp.max(s, axis=-1)], axis=-1)  # (B,H,W,2)
    w_hwio = jnp.transpose(p["sa_w"], (1, 2, 0))[:, :, :, None]           # (7,7,2,1)
    att = jax.lax.conv_general_dilated(
        am, w_hwio, (1, 1), ((3, 3), (3, 3)),
        dimension_numbers=("NHWC", "HWIO", "NHWC"))
    return jax.nn.sigmoid(att) * s + x1


def rg_reference(x_nchw, params):
    x = jnp.transpose(x_nchw, (0, 2, 3, 1)).astype(jnp.float32)
    y = x
    for p in params["blocks"]:
        y = _ref_rcsab(y, p)
    y = _ref_conv3x3(y, params["final_w"], params["final_b"]) + x
    return jnp.transpose(y, (0, 3, 1, 2))


# ---------------------------------------------------------------------------
# Deterministic synthetic parameters
# ---------------------------------------------------------------------------
def init_params(key, C, reduction, num_rcab):
    Cr = C // reduction

    def norm(k, shape, scale):
        return scale * jax.random.normal(k, shape, jnp.float32)

    blocks = []
    for i in range(num_rcab):
        k = jax.random.fold_in(key, i)
        ks = jax.random.split(k, 11)
        blocks.append(dict(
            w1=norm(ks[0], (3, 3, C, C), 0.05),  b1=norm(ks[1], (C,), 0.05),
            w2=norm(ks[2], (3, 3, C, C), 0.05),  b2=norm(ks[3], (C,), 0.05),
            ca_w1=norm(ks[4], (C, Cr), 0.1),     ca_b1=norm(ks[5], (Cr,), 0.1),
            ca_w2=norm(ks[6], (Cr, C), 0.1),     ca_b2=norm(ks[7], (C,), 0.1),
            w3=norm(ks[8], (3, 3, C, C), 0.05),  b3=norm(ks[9], (C,), 0.05),
            sa_w=norm(ks[10], (2, 7, 7), 0.1),   # (in_c={mean,max}, kh, kw), no bias
        ))
    kf = jax.random.fold_in(key, 10_000)
    k1, k2 = jax.random.split(kf)
    return dict(blocks=blocks,
                final_w=norm(k1, (3, 3, C, C), 0.05),
                final_b=norm(k2, (C,), 0.05))


if __name__ == "__main__":
    # Small shapes consistent with the module: B=2, C=16, H=W=8 (W*C = 128 lanes),
    # reduction=4, num_rcab=2.
    B, C, H, W = 2, 16, 8, 8
    reduction, num_rcab = 4, 2

    key = jax.random.PRNGKey(0)
    kx, kp = jax.random.split(key)
    x = jax.random.normal(kx, (B, C, H, W), jnp.float32)   # NCHW, like PyTorch
    params = init_params(kp, C, reduction, num_rcab)

    out = jax.block_until_ready(jax.jit(rg_forward)(x, params))
    ref = jax.block_until_ready(jax.jit(rg_reference)(x, params))

    assert out.shape == (B, C, H, W), out.shape
    assert jnp.all(jnp.isfinite(out))
    max_err = float(jnp.max(jnp.abs(out - ref)))
    assert max_err < 1e-3, f"mismatch vs reference: {max_err}"
    print("KERNEL_OK")
</pallas_src>

<mosaic_0001>
module attributes {stable_mosaic.version = 11 : i64} {
  func.func @_rcsab_kernel(%arg0: i32, %arg1: memref<1x8x128xf32, #tpu.memory_space<vmem>>, %arg2: memref<480x128xf32, #tpu.memory_space<vmem>>, %arg3: memref<1x128xf32, #tpu.memory_space<vmem>>, %arg4: memref<480x128xf32, #tpu.memory_space<vmem>>, %arg5: memref<1x128xf32, #tpu.memory_space<vmem>>, %arg6: memref<16x4xf32, #tpu.memory_space<vmem>>, %arg7: memref<1x4xf32, #tpu.memory_space<vmem>>, %arg8: memref<4x16xf32, #tpu.memory_space<vmem>>, %arg9: memref<1x16xf32, #tpu.memory_space<vmem>>, %arg10: memref<480x128xf32, #tpu.memory_space<vmem>>, %arg11: memref<1x128xf32, #tpu.memory_space<vmem>>, %arg12: memref<196x8xf32, #tpu.memory_space<vmem>>, %arg13: memref<1x8x128xf32, #tpu.memory_space<vmem>>) attributes {dimension_semantics = [#tpu.dimension_semantics<parallel>], iteration_bounds = array<i64: 2>, scalar_prefetch = 0 : i64, scratch_operands = 0 : i64, tpu.core_type = #tpu.core_type<tc>, window_params = [{transform_indices = @transform_0, window_bounds = array<i64: 1, 8, 128>}, {pipeline_mode = #tpu.pipeline_mode<synchronous>, transform_indices = @transform_1, window_bounds = array<i64: 480, 128>}, {pipeline_mode = #tpu.pipeline_mode<synchronous>, transform_indices = @transform_2, window_bounds = array<i64: 1, 128>}, {pipeline_mode = #tpu.pipeline_mode<synchronous>, transform_indices = @transform_3, window_bounds = array<i64: 480, 128>}, {pipeline_mode = #tpu.pipeline_mode<synchronous>, transform_indices = @transform_4, window_bounds = array<i64: 1, 128>}, {pipeline_mode = #tpu.pipeline_mode<synchronous>, transform_indices = @transform_5, window_bounds = array<i64: 16, 4>}, {pipeline_mode = #tpu.pipeline_mode<synchronous>, transform_indices = @transform_6, window_bounds = array<i64: 1, 4>}, {pipeline_mode = #tpu.pipeline_mode<synchronous>, transform_indices = @transform_7, window_bounds = array<i64: 4, 16>}, {pipeline_mode = #tpu.pipeline_mode<synchronous>, transform_indices = @transform_8, window_bounds = array<i64: 1, 16>}, {pipeline_mode = #tpu.pipeline_mode<synchronous>, transform_indices = @transform_9, window_bounds = array<i64: 480, 128>}, {pipeline_mode = #tpu.pipeline_mode<synchronous>, transform_indices = @transform_10, window_bounds = array<i64: 1, 128>}, {pipeline_mode = #tpu.pipeline_mode<synchronous>, transform_indices = @transform_11, window_bounds = array<i64: 196, 8>}, {transform_indices = @transform_12, window_bounds = array<i64: 1, 8, 128>}]} {
    %c0 = arith.constant 0 : index
    %c0_0 = arith.constant 0 : index
    %c0_1 = arith.constant 0 : index
    %0 = vector.load %arg1[%c0, %c0_0, %c0_1] : memref<1x8x128xf32, #tpu.memory_space<vmem>>, vector<1x8x128xf32>
    %1 = vector.shape_cast %0 : vector<1x8x128xf32> to vector<8x128xf32>
    %cst = arith.constant 0.000000e+00 : f32
    %2 = vector.broadcast %cst : f32 to vector<8x16xf32>
    %3 = tpu.concatenate %2, %1, %2 in 1 : vector<8x16xf32>, vector<8x128xf32>, vector<8x16xf32> -> vector<8x160xf32>
    %cst_2 = arith.constant 0.000000e+00 : f32
    %4 = vector.broadcast %cst_2 : f32 to vector<1x160xf32>
    %5 = tpu.concatenate %4, %3, %4 in 0 : vector<1x160xf32>, vector<8x160xf32>, vector<1x160xf32> -> vector<10x160xf32>
    %6 = vector.extract_strided_slice %5 {offsets = [0, 0], sizes = [8, 160], strides = [1, 1]} : vector<10x160xf32> to vector<8x160xf32>
    %7 = vector.extract_strided_slice %5 {offsets = [1, 0], sizes = [8, 160], strides = [1, 1]} : vector<10x160xf32> to vector<8x160xf32>
    %8 = vector.extract_strided_slice %5 {offsets = [2, 0], sizes = [8, 160], strides = [1, 1]} : vector<10x160xf32> to vector<8x160xf32>
    %9 = tpu.concatenate %6, %7, %8 in 1 : vector<8x160xf32>, vector<8x160xf32>, vector<8x160xf32> -> vector<8x480xf32>
    %c0_3 = arith.constant 0 : index
    %c0_4 = arith.constant 0 : index
    %10 = vector.load %arg2[%c0_3, %c0_4] : memref<480x128xf32, #tpu.memory_space<vmem>>, vector<480x128xf32>
    %cst_5 = arith.constant dense<0.000000e+00> : vector<8x128xf32>
    %11 = tpu.matmul %9, %10, %cst_5 {dimension_numbers = #tpu.dot_dimension_numbers<[1], [0], [0], [1], [0, 0, 1, 1], [], []>} : vector<8x480xf32>, vector<480x128xf32>, vector<8x128xf32> -> vector<8x128xf32>
    %c0_6 = arith.constant 0 : index
    %c0_7 = arith.constant 0 : index
    %12 = vector.load %arg3[%c0_6, %c0_7] : memref<1x128xf32, #tpu.memory_space<vmem>>, vector<1x128xf32>
    %13 = vector.broadcast %12 : vector<1x128xf32> to vector<8x128xf32>
    %14 = arith.addf %11, %13 : vector<8x128xf32>
    %cst_8 = arith.constant 0.000000e+00 : f32
    %15 = vector.broadcast %cst_8 : f32 to vector<8x128xf32>
    %16 = arith.maximumf %14, %15 : vector<8x128xf32>
    %cst_9 = arith.constant 0.000000e+00 : f32
    %17 = vector.broadcast %cst_9 : f32 to vector<8x16xf32>
    %18 = tpu.concatenate %17, %16, %17 in 1 : vector<8x16xf32>, vector<8x128xf32>, vector<8x16xf32> -> vector<8x160xf32>
    %cst_10 = arith.constant 0.000000e+00 : f32
    %19 = vector.broadcast %cst_10 : f32 to vector<1x160xf32>
    %20 = tpu.concatenate %19, %18, %19 in 0 : vector<1x160xf32>, vector<8x160xf32>, vector<1x160xf32> -> vector<10x160xf32>
    %21 = vector.extract_strided_slice %20 {offsets = [0, 0], sizes = [8, 160], strides = [1, 1]} : vector<10x160xf32> to vector<8x160xf32>
    %22 = vector.extract_strided_slice %20 {offsets = [1, 0], sizes = [8, 160], strides = [1, 1]} : vector<10x160xf32> to vector<8x160xf32>
    %23 = vector.extract_strided_slice %20 {offsets = [2, 0], sizes = [8, 160], strides = [1, 1]} : vector<10x160xf32> to vector<8x160xf32>
    %24 = tpu.concatenate %21, %22, %23 in 1 : vector<8x160xf32>, vector<8x160xf32>, vector<8x160xf32> -> vector<8x480xf32>
    %c0_11 = arith.constant 0 : index
    %c0_12 = arith.constant 0 : index
    %25 = vector.load %arg4[%c0_11, %c0_12] : memref<480x128xf32, #tpu.memory_space<vmem>>, vector<480x128xf32>
    %cst_13 = arith.constant dense<0.000000e+00> : vector<8x128xf32>
    %26 = tpu.matmul %24, %25, %cst_13 {dimension_numbers = #tpu.dot_dimension_numbers<[1], [0], [0], [1], [0, 0, 1, 1], [], []>} : vector<8x480xf32>, vector<480x128xf32>, vector<8x128xf32> -> vector<8x128xf32>
    %c0_14 = arith.constant 0 : index
    %c0_15 = arith.constant 0 : index
    %27 = vector.load %arg5[%c0_14, %c0_15] : memref<1x128xf32, #tpu.memory_space<vmem>>, vector<1x128xf32>
    %28 = vector.broadcast %27 : vector<1x128xf32> to vector<8x128xf32>
    %29 = arith.addf %26, %28 : vector<8x128xf32>
    %cst_16 = arith.constant dense<0.000000e+00> : vector<128xf32>
    %30 = vector.multi_reduction <add>, %29, %cst_16 [0] : vector<8x128xf32> to vector<128xf32>
    %31 = vector.shape_cast %30 : vector<128xf32> to vector<1x128xf32>
    %32 = vector.extract_strided_slice %31 {offsets = [0, 0], sizes = [1, 16], strides = [1, 1]} : vector<1x128xf32> to vector<1x16xf32>
    %33 = vector.extract_strided_slice %31 {offsets = [0, 16], sizes = [1, 16], strides = [1, 1]} : vector<1x128xf32> to vector<1x16xf32>
    %34 = arith.addf %32, %33 : vector<1x16xf32>
    %35 = vector.extract_strided_slice %31 {offsets = [0, 32], sizes = [1, 16], strides = [1, 1]} : vector<1x128xf32> to vector<1x16xf32>
    %36 = arith.addf %34, %35 : vector<1x16xf32>
    %37 = vector.extract_strided_slice %31 {offsets = [0, 48], sizes = [1, 16], strides = [1, 1]} : vector<1x128xf32> to vector<1x16xf32>
    %38 = arith.addf %36, %37 : vector<1x16xf32>
    %39 = vector.extract_strided_slice %31 {offsets = [0, 64], sizes = [1, 16], strides = [1, 1]} : vector<1x128xf32> to vector<1x16xf32>
    %40 = arith.addf %38, %39 : vector<1x16xf32>
    %41 = vector.extract_strided_slice %31 {offsets = [0, 80], sizes = [1, 16], strides = [1, 1]} : vector<1x128xf32> to vector<1x16xf32>
    %42 = arith.addf %40, %41 : vector<1x16xf32>
    %43 = vector.extract_strided_slice %31 {offsets = [0, 96], sizes = [1, 16], strides = [1, 1]} : vector<1x128xf32> to vector<1x16xf32>
    %44 = arith.addf %42, %43 : vector<1x16xf32>
    %45 = vector.extract_strided_slice %31 {offsets = [0, 112], sizes = [1, 16], strides = [1, 1]} : vector<1x128xf32> to vector<1x16xf32>
    %46 = arith.addf %44, %45 : vector<1x16xf32>
    %cst_17 = arith.constant 1.562500e-02 : f32
    %47 = vector.broadcast %cst_17 : f32 to vector<1x16xf32>
    %48 = arith.mulf %46, %47 : vector<1x16xf32>
    %c0_18 = arith.constant 0 : index
    %c0_19 = arith.constant 0 : index
    %49 = vector.load %arg6[%c0_18, %c0_19] : memref<16x4xf32, #tpu.memory_space<vmem>>, vector<16x4xf32>
    %cst_20 = arith.constant dense<0.000000e+00> : vector<1x4xf32>
    %50 = tpu.matmul %48, %49, %cst_20 {dimension_numbers = #tpu.dot_dimension_numbers<[1], [0], [0], [1], [0, 0, 1, 1], [], []>} : vector<1x16xf32>, vector<16x4xf32>, vector<1x4xf32> -> vector<1x4xf32>
    %c0_21 = arith.constant 0 : index
    %c0_22 = arith.constant 0 : index
    %51 = vector.load %arg7[%c0_21, %c0_22] : memref<1x4xf32, #tpu.memory_space<vmem>>, vector<1x4xf32>
    %52 = arith.addf %50, %51 : vector<1x4xf32>
    %cst_23 = arith.constant 0.000000e+00 : f32
    %53 = vector.broadcast %cst_23 : f32 to vector<1x4xf32>
    %54 = arith.maximumf %52, %53 : vector<1x4xf32>
    %c0_24 = arith.constant 0 : index
    %c0_25 = arith.constant 0 : index
    %55 = vector.load %arg8[%c0_24, %c0_25] : memref<4x16xf32, #tpu.memory_space<vmem>>, vector<4x16xf32>
    %cst_26 = arith.constant dense<0.000000e+00> : vector<1x16xf32>
    %56 = tpu.matmul %54, %55, %cst_26 {dimension_numbers = #tpu.dot_dimension_numbers<[1], [0], [0], [1], [0, 0, 1, 1], [], []>} : vector<1x4xf32>, vector<4x16xf32>, vector<1x16xf32> -> vector<1x16xf32>
    %c0_27 = arith.constant 0 : index
    %c0_28 = arith.constant 0 : index
    %57 = vector.load %arg9[%c0_27, %c0_28] : memref<1x16xf32, #tpu.memory_space<vmem>>, vector<1x16xf32>
    %58 = arith.addf %56, %57 : vector<1x16xf32>
    %cst_29 = arith.constant 0.000000e+00 : f32
    %59 = vector.broadcast %cst_29 : f32 to vector<1x16xf32>
    %60 = arith.subf %59, %58 : vector<1x16xf32>
    %61 = math.exp %60 : vector<1x16xf32>
    %cst_30 = arith.constant 1.000000e+00 : f32
    %62 = vector.broadcast %cst_30 : f32 to vector<1x16xf32>
    %63 = arith.addf %62, %61 : vector<1x16xf32>
    %64 = tpu.reciprocal %63 : vector<1x16xf32> -> vector<1x16xf32>
    %65 = tpu.concatenate %64, %64, %64, %64, %64, %64, %64, %64 in 1 : vector<1x16xf32>, vector<1x16xf32>, vector<1x16xf32>, vector<1x16xf32>, vector<1x16xf32>, vector<1x16xf32>, vector<1x16xf32>, vector<1x16xf32> -> vector<1x128xf32>
    %66 = vector.broadcast %65 : vector<1x128xf32> to vector<8x128xf32>
    %67 = arith.mulf %29, %66 : vector<8x128xf32>
    %cst_31 = arith.constant 0.000000e+00 : f32
    %68 = vector.broadcast %cst_31 : f32 to vector<8x16xf32>
    %69 = tpu.concatenate %68, %67, %68 in 1 : vector<8x16xf32>, vector<8x128xf32>, vector<8x16xf32> -> vector<8x160xf32>
    %cst_32 = arith.constant 0.000000e+00 : f32
    %70 = vector.broadcast %cst_32 : f32 to vector<1x160xf32>
    %71 = tpu.concatenate %70, %69, %70 in 0 : vector<1x160xf32>, vector<8x160xf32>, vector<1x160xf32> -> vector<10x160xf32>
    %72 = vector.extract_strided_slice %71 {offsets = [0, 0], sizes = [8, 160], strides = [1, 1]} : vector<10x160xf32> to vector<8x160xf32>
    %73 = vector.extract_strided_slice %71 {offsets = [1, 0], sizes = [8, 160], strides = [1, 1]} : vector<10x160xf32> to vector<8x160xf32>
    %74 = vector.extract_strided_slice %71 {offsets = [2, 0], sizes = [8, 160], strides = [1, 1]} : vector<10x160xf32> to vector<8x160xf32>
    %75 = tpu.concatenate %72, %73, %74 in 1 : vector<8x160xf32>, vector<8x160xf32>, vector<8x160xf32> -> vector<8x480xf32>
    %c0_33 = arith.constant 0 : index
    %c0_34 = arith.constant 0 : index
    %76 = vector.load %arg10[%c0_33, %c0_34] : memref<480x128xf32, #tpu.memory_space<vmem>>, vector<480x128xf32>
    %cst_35 = arith.constant dense<0.000000e+00> : vector<8x128xf32>
    %77 = tpu.matmul %75, %76, %cst_35 {dimension_numbers = #tpu.dot_dimension_numbers<[1], [0], [0], [1], [0, 0, 1, 1], [], []>} : vector<8x480xf32>, vector<480x128xf32>, vector<8x128xf32> -> vector<8x128xf32>
    %c0_36 = arith.constant 0 : index
    %c0_37 = arith.constant 0 : index
    %78 = vector.load %arg11[%c0_36, %c0_37] : memref<1x128xf32, #tpu.memory_space<vmem>>, vector<1x128xf32>
    %79 = vector.broadcast %78 : vector<1x128xf32> to vector<8x128xf32>
    %80 = arith.addf %77, %79 : vector<8x128xf32>
    %81 = arith.addf %80, %14 : vector<8x128xf32>
    %82 = vector.extract_strided_slice %81 {offsets = [0, 0], sizes = [8, 16], strides = [1, 1]} : vector<8x128xf32> to vector<8x16xf32>
    %cst_38 = arith.constant dense<0.000000e+00> : vector<8xf32>
    %83 = vector.multi_reduction <add>, %82, %cst_38 [1] : vector<8x16xf32> to vector<8xf32>
    %84 = vector.shape_cast %83 : vector<8xf32> to vector<8x1xf32>
    %cst_39 = arith.constant 1.600000e+01 : f32
    %85 = vector.broadcast %cst_39 : f32 to vector<8x1xf32>
    %86 = arith.divf %84, %85 : vector<8x1xf32>
    %cst_40 = arith.constant dense<0xFF800000> : vector<8xf32>
    %87 = vector.multi_reduction <maximumf>, %82, %cst_40 [1] : vector<8x16xf32> to vector<8xf32>
    %88 = vector.shape_cast %87 : vector<8xf32> to vector<8x1xf32>
    %89 = vector.extract_strided_slice %81 {offsets = [0, 16], sizes = [8, 16], strides = [1, 1]} : vector<8x128xf32> to vector<8x16xf32>
    %cst_41 = arith.constant dense<0.000000e+00> : vector<8xf32>
    %90 = vector.multi_reduction <add>, %89, %cst_41 [1] : vector<8x16xf32> to vector<8xf32>
    %91 = vector.shape_cast %90 : vector<8xf32> to vector<8x1xf32>
    %cst_42 = arith.constant 1.600000e+01 : f32
    %92 = vector.broadcast %cst_42 : f32 to vector<8x1xf32>
    %93 = arith.divf %91, %92 : vector<8x1xf32>
    %cst_43 = arith.constant dense<0xFF800000> : vector<8xf32>
    %94 = vector.multi_reduction <maximumf>, %89, %cst_43 [1] : vector<8x16xf32> to vector<8xf32>
    %95 = vector.shape_cast %94 : vector<8xf32> to vector<8x1xf32>
    %96 = vector.extract_strided_slice %81 {offsets = [0, 32], sizes = [8, 16], strides = [1, 1]} : vector<8x128xf32> to vector<8x16xf32>
    %cst_44 = arith.constant dense<0.000000e+00> : vector<8xf32>
    %97 = vector.multi_reduction <add>, %96, %cst_44 [1] : vector<8x16xf32> to vector<8xf32>
    %98 = vector.shape_cast %97 : vector<8xf32> to vector<8x1xf32>
    %cst_45 = arith.constant 1.600000e+01 : f32
    %99 = vector.broadcast %cst_45 : f32 to vector<8x1xf32>
    %100 = arith.divf %98, %99 : vector<8x1xf32>
    %cst_46 = arith.constant dense<0xFF800000> : vector<8xf32>
    %101 = vector.multi_reduction <maximumf>, %96, %cst_46 [1] : vector<8x16xf32> to vector<8xf32>
    %102 = vector.shape_cast %101 : vector<8xf32> to vector<8x1xf32>
    %103 = vector.extract_strided_slice %81 {offsets = [0, 48], sizes = [8, 16], strides = [1, 1]} : vector<8x128xf32> to vector<8x16xf32>
    %cst_47 = arith.constant dense<0.000000e+00> : vector<8xf32>
    %104 = vector.multi_reduction <add>, %103, %cst_47 [1] : vector<8x16xf32> to vector<8xf32>
    %105 = vector.shape_cast %104 : vector<8xf32> to vector<8x1xf32>
    %cst_48 = arith.constant 1.600000e+01 : f32
    %106 = vector.broadcast %cst_48 : f32 to vector<8x1xf32>
    %107 = arith.divf %105, %106 : vector<8x1xf32>
    %cst_49 = arith.constant dense<0xFF800000> : vector<8xf32>
    %108 = vector.multi_reduction <maximumf>, %103, %cst_49 [1] : vector<8x16xf32> to vector<8xf32>
    %109 = vector.shape_cast %108 : vector<8xf32> to vector<8x1xf32>
    %110 = vector.extract_strided_slice %81 {offsets = [0, 64], sizes = [8, 16], strides = [1, 1]} : vector<8x128xf32> to vector<8x16xf32>
    %cst_50 = arith.constant dense<0.000000e+00> : vector<8xf32>
    %111 = vector.multi_reduction <add>, %110, %cst_50 [1] : vector<8x16xf32> to vector<8xf32>
    %112 = vector.shape_cast %111 : vector<8xf32> to vector<8x1xf32>
    %cst_51 = arith.constant 1.600000e+01 : f32
    %113 = vector.broadcast %cst_51 : f32 to vector<8x1xf32>
    %114 = arith.divf %112, %113 : vector<8x1xf32>
    %cst_52 = arith.constant dense<0xFF800000> : vector<8xf32>
    %115 = vector.multi_reduction <maximumf>, %110, %cst_52 [1] : vector<8x16xf32> to vector<8xf32>
    %116 = vector.shape_cast %115 : vector<8xf32> to vector<8x1xf32>
    %117 = vector.extract_strided_slice %81 {offsets = [0, 80], sizes = [8, 16], strides = [1, 1]} : vector<8x128xf32> to vector<8x16xf32>
    %cst_53 = arith.constant dense<0.000000e+00> : vector<8xf32>
    %118 = vector.multi_reduction <add>, %117, %cst_53 [1] : vector<8x16xf32> to vector<8xf32>
    %119 = vector.shape_cast %118 : vector<8xf32> to vector<8x1xf32>
    %cst_54 = arith.constant 1.600000e+01 : f32
    %120 = vector.broadcast %cst_54 : f32 to vector<8x1xf32>
    %121 = arith.divf %119, %120 : vector<8x1xf32>
    %cst_55 = arith.constant dense<0xFF800000> : vector<8xf32>
    %122 = vector.multi_reduction <maximumf>, %117, %cst_55 [1] : vector<8x16xf32> to vector<8xf32>
    %123 = vector.shape_cast %122 : vector<8xf32> to vector<8x1xf32>
    %124 = vector.extract_strided_slice %81 {offsets = [0, 96], sizes = [8, 16], strides = [1, 1]} : vector<8x128xf32> to vector<8x16xf32>
    %cst_56 = arith.constant dense<0.000000e+00> : vector<8xf32>
    %125 = vector.multi_reduction <add>, %124, %cst_56 [1] : vector<8x16xf32> to vector<8xf32>
    %126 = vector.shape_cast %125 : vector<8xf32> to vector<8x1xf32>
    %cst_57 = arith.constant 1.600000e+01 : f32
    %127 = vector.broadcast %cst_57 : f32 to vector<8x1xf32>
    %128 = arith.divf %126, %127 : vector<8x1xf32>
    %cst_58 = arith.constant dense<0xFF800000> : vector<8xf32>
    %129 = vector.multi_reduction <maximumf>, %124, %cst_58 [1] : vector<8x16xf32> to vector<8xf32>
    %130 = vector.shape_cast %129 : vector<8xf32> to vector<8x1xf32>
    %131 = vector.extract_strided_slice %81 {offsets = [0, 112], sizes = [8, 16], strides = [1, 1]} : vector<8x128xf32> to vector<8x16xf32>
    %cst_59 = arith.constant dense<0.000000e+00> : vector<8xf32>
    %132 = vector.multi_reduction <add>, %131, %cst_59 [1] : vector<8x16xf32> to vector<8xf32>
    %133 = vector.shape_cast %132 : vector<8xf32> to vector<8x1xf32>
    %cst_60 = arith.constant 1.600000e+01 : f32
    %134 = vector.broadcast %cst_60 : f32 to vector<8x1xf32>
    %135 = arith.divf %133, %134 : vector<8x1xf32>
    %cst_61 = arith.constant dense<0xFF800000> : vector<8xf32>
    %136 = vector.multi_reduction <maximumf>, %131, %cst_61 [1] : vector<8x16xf32> to vector<8xf32>
    %137 = vector.shape_cast %136 : vector<8xf32> to vector<8x1xf32>
    %138 = tpu.concatenate %86, %93, %100, %107, %114, %121, %128, %135 in 1 : vector<8x1xf32>, vector<8x1xf32>, vector<8x1xf32>, vector<8x1xf32>, vector<8x1xf32>, vector<8x1xf32>, vector<8x1xf32>, vector<8x1xf32> -> vector<8x8xf32>
    %139 = tpu.concatenate %88, %95, %102, %109, %116, %123, %130, %137 in 1 : vector<8x1xf32>, vector<8x1xf32>, vector<8x1xf32>, vector<8x1xf32>, vector<8x1xf32>, vector<8x1xf32>, vector<8x1xf32>, vector<8x1xf32> -> vector<8x8xf32>
    %cst_62 = arith.constant 0.000000e+00 : f32
    %140 = vector.broadcast %cst_62 : f32 to vector<8x3xf32>
    %141 = tpu.concatenate %140, %138, %140 in 1 : vector<8x3xf32>, vector<8x8xf32>, vector<8x3xf32> -> vector<8x14xf32>
    %cst_63 = arith.constant 0.000000e+00 : f32
    %142 = vector.broadcast %cst_63 : f32 to vector<3x14xf32>
    %143 = tpu.concatenate %142, %141, %142 in 0 : vector<3x14xf32>, vector<8x14xf32>, vector<3x14xf32> -> vector<14x14xf32>
    %cst_64 = arith.constant 0.000000e+00 : f32
    %144 = vector.broadcast %cst_64 : f32 to vector<8x3xf32>
    %145 = tpu.concatenate %144, %139, %144 in 1 : vector<8x3xf32>, vector<8x8xf32>, vector<8x3xf32> -> vector<8x14xf32>
    %cst_65 = arith.constant 0.000000e+00 : f32
    %146 = vector.broadcast %cst_65 : f32 to vector<3x14xf32>
    %147 = tpu.concatenate %146, %145, %146 in 0 : vector<3x14xf32>, vector<8x14xf32>, vector<3x14xf32> -> vector<14x14xf32>
    %148 = vector.extract_strided_slice %143 {offsets = [0, 0], sizes = [8, 14], strides = [1, 1]} : vector<14x14xf32> to vector<8x14xf32>
    %149 = vector.extract_strided_slice %143 {offsets = [1, 0], sizes = [8, 14], strides = [1, 1]} : vector<14x14xf32> to vector<8x14xf32>
    %150 = vector.extract_strided_slice %143 {offsets = [2, 0], sizes = [8, 14], strides = [1, 1]} : vector<14x14xf32> to vector<8x14xf32>
    %151 = vector.extract_strided_slice %143 {offsets = [3, 0], sizes = [8, 14], strides = [1, 1]} : vector<14x14xf32> to vector<8x14xf32>
    %152 = vector.extract_strided_slice %143 {offsets = [4, 0], sizes = [8, 14], strides = [1, 1]} : vector<14x14xf32> to vector<8x14xf32>
    %153 = vector.extract_strided_slice %143 {offsets = [5, 0], sizes = [8, 14], strides = [1, 1]} : vector<14x14xf32> to vector<8x14xf32>
    %154 = vector.extract_strided_slice %143 {offsets = [6, 0], sizes = [8, 14], strides = [1, 1]} : vector<14x14xf32> to vector<8x14xf32>
    %155 = vector.extract_strided_slice %147 {offsets = [0, 0], sizes = [8, 14], strides = [1, 1]} : vector<14x14xf32> to vector<8x14xf32>
    %156 = vector.extract_strided_slice %147 {offsets = [1, 0], sizes = [8, 14], strides = [1, 1]} : vector<14x14xf32> to vector<8x14xf32>
    %157 = vector.extract_strided_slice %147 {offsets = [2, 0], sizes = [8, 14], strides = [1, 1]} : vector<14x14xf32> to vector<8x14xf32>
    %158 = vector.extract_strided_slice %147 {offsets = [3, 0], sizes = [8, 14], strides = [1, 1]} : vector<14x14xf32> to vector<8x14xf32>
    %159 = vector.extract_strided_slice %147 {offsets = [4, 0], sizes = [8, 14], strides = [1, 1]} : vector<14x14xf32> to vector<8x14xf32>
    %160 = vector.extract_strided_slice %147 {offsets = [5, 0], sizes = [8, 14], strides = [1, 1]} : vector<14x14xf32> to vector<8x14xf32>
    %161 = vector.extract_strided_slice %147 {offsets = [6, 0], sizes = [8, 14], strides = [1, 1]} : vector<14x14xf32> to vector<8x14xf32>
    %162 = tpu.concatenate %148, %149, %150, %151, %152, %153, %154, %155, %156, %157, %158, %159, %160, %161 in 1 : vector<8x14xf32>, vector<8x14xf32>, vector<8x14xf32>, vector<8x14xf32>, vector<8x14xf32>, vector<8x14xf32>, vector<8x14xf32>, vector<8x14xf32>, vector<8x14xf32>, vector<8x14xf32>, vector<8x14xf32>, vector<8x14xf32>, vector<8x14xf32>, vector<8x14xf32> -> vector<8x196xf32>
    %c0_66 = arith.constant 0 : index
    %c0_67 = arith.constant 0 : index
    %163 = vector.load %arg12[%c0_66, %c0_67] : memref<196x8xf32, #tpu.memory_space<vmem>>, vector<196x8xf32>
    %cst_68 = arith.constant dense<0.000000e+00> : vector<8x8xf32>
    %164 = tpu.matmul %162, %163, %cst_68 {dimension_numbers = #tpu.dot_dimension_numbers<[1], [0], [0], [1], [0, 0, 1, 1], [], []>} : vector<8x196xf32>, vector<196x8xf32>, vector<8x8xf32> -> vector<8x8xf32>
    %cst_69 = arith.constant 0.000000e+00 : f32
    %165 = vector.broadcast %cst_69 : f32 to vector<8x8xf32>
    %166 = arith.subf %165, %164 : vector<8x8xf32>
    %167 = math.exp %166 : vector<8x8xf32>
    %cst_70 = arith.constant 1.000000e+00 : f32
    %168 = vector.broadcast %cst_70 : f32 to vector<8x8xf32>
    %169 = arith.addf %168, %167 : vector<8x8xf32>
    %170 = tpu.reciprocal %169 : vector<8x8xf32> -> vector<8x8xf32>
    %171 = vector.extract_strided_slice %170 {offsets = [0, 0], sizes = [8, 1], strides = [1, 1]} : vector<8x8xf32> to vector<8x1xf32>
    %172 = vector.shape_cast %171 : vector<8x1xf32> to vector<8x1xf32>
    %173 = vector.broadcast %172 : vector<8x1xf32> to vector<8x16xf32>
    %174 = vector.extract_strided_slice %170 {offsets = [0, 1], sizes = [8, 1], strides = [1, 1]} : vector<8x8xf32> to vector<8x1xf32>
    %175 = vector.shape_cast %174 : vector<8x1xf32> to vector<8x1xf32>
    %176 = vector.broadcast %175 : vector<8x1xf32> to vector<8x16xf32>
    %177 = vector.extract_strided_slice %170 {offsets = [0, 2], sizes = [8, 1], strides = [1, 1]} : vector<8x8xf32> to vector<8x1xf32>
    %178 = vector.shape_cast %177 : vector<8x1xf32> to vector<8x1xf32>
    %179 = vector.broadcast %178 : vector<8x1xf32> to vector<8x16xf32>
    %180 = vector.extract_strided_slice %170 {offsets = [0, 3], sizes = [8, 1], strides = [1, 1]} : vector<8x8xf32> to vector<8x1xf32>
    %181 = vector.shape_cast %180 : vector<8x1xf32> to vector<8x1xf32>
    %182 = vector.broadcast %181 : vector<8x1xf32> to vector<8x16xf32>
    %183 = vector.extract_strided_slice %170 {offsets = [0, 4], sizes = [8, 1], strides = [1, 1]} : vector<8x8xf32> to vector<8x1xf32>
    %184 = vector.shape_cast %183 : vector<8x1xf32> to vector<8x1xf32>
    %185 = vector.broadcast %184 : vector<8x1xf32> to vector<8x16xf32>
    %186 = vector.extract_strided_slice %170 {offsets = [0, 5], sizes = [8, 1], strides = [1, 1]} : vector<8x8xf32> to vector<8x1xf32>
    %187 = vector.shape_cast %186 : vector<8x1xf32> to vector<8x1xf32>
    %188 = vector.broadcast %187 : vector<8x1xf32> to vector<8x16xf32>
    %189 = vector.extract_strided_slice %170 {offsets = [0, 6], sizes = [8, 1], strides = [1, 1]} : vector<8x8xf32> to vector<8x1xf32>
    %190 = vector.shape_cast %189 : vector<8x1xf32> to vector<8x1xf32>
    %191 = vector.broadcast %190 : vector<8x1xf32> to vector<8x16xf32>
    %192 = vector.extract_strided_slice %170 {offsets = [0, 7], sizes = [8, 1], strides = [1, 1]} : vector<8x8xf32> to vector<8x1xf32>
    %193 = vector.shape_cast %192 : vector<8x1xf32> to vector<8x1xf32>
    %194 = vector.broadcast %193 : vector<8x1xf32> to vector<8x16xf32>
    %195 = tpu.concatenate %173, %176, %179, %182, %185, %188, %191, %194 in 1 : vector<8x16xf32>, vector<8x16xf32>, vector<8x16xf32>, vector<8x16xf32>, vector<8x16xf32>, vector<8x16xf32>, vector<8x16xf32>, vector<8x16xf32> -> vector<8x128xf32>
    %196 = arith.mulf %195, %81 : vector<8x128xf32>
    %197 = arith.addf %196, %80 : vector<8x128xf32>
    %c0_71 = arith.constant 0 : index
    %c0_72 = arith.constant 0 : index
    %c0_73 = arith.constant 0 : index
    %198 = vector.load %arg13[%c0_71, %c0_72, %c0_73] : memref<1x8x128xf32, #tpu.memory_space<vmem>>, vector<1x8x128xf32>
    %199 = vector.shape_cast %198 : vector<1x8x128xf32> to vector<8x128xf32>
    %200 = vector.shape_cast %197 : vector<8x128xf32> to vector<1x8x128xf32>
    tpu.vector_store %arg13[%c0_71, %c0_72, %c0_73], %200 {strides = array<i32>} : memref<1x8x128xf32, #tpu.memory_space<vmem>>, vector<1x8x128xf32>,
    return
  }
  func.func @transform_0(%arg0: i32) -> (i32, i32, i32) {
    %c0_i32 = arith.constant 0 : i32
    %c0_i32_0 = arith.constant 0 : i32
    %c0_i32_1 = arith.constant 0 : i32
    return %arg0, %c0_i32, %c0_i32_0 : i32, i32, i32
  }
  func.func @transform_1(%arg0: i32) -> (i32, i32) {
    %c0_i32 = arith.constant 0 : i32
    %c0_i32_0 = arith.constant 0 : i32
    %c0_i32_1 = arith.constant 0 : i32
    return %c0_i32, %c0_i32_0 : i32, i32
  }
  func.func @transform_2(%arg0: i32) -> (i32, i32) {
    %c0_i32 = arith.constant 0 : i32
    %c0_i32_0 = arith.constant 0 : i32
    %c0_i32_1 = arith.constant 0 : i32
    return %c0_i32, %c0_i32_0 : i32, i32
  }
  func.func @transform_3(%arg0: i32) -> (i32, i32) {
    %c0_i32 = arith.constant 0 : i32
    %c0_i32_0 = arith.constant 0 : i32
    %c0_i32_1 = arith.constant 0 : i32
    return %c0_i32, %c0_i32_0 : i32, i32
  }
  func.func @transform_4(%arg0: i32) -> (i32, i32) {
    %c0_i32 = arith.constant 0 : i32
    %c0_i32_0 = arith.constant 0 : i32
    %c0_i32_1 = arith.constant 0 : i32
    return %c0_i32, %c0_i32_0 : i32, i32
  }
  func.func @transform_5(%arg0: i32) -> (i32, i32) {
    %c0_i32 = arith.constant 0 : i32
    %c0_i32_0 = arith.constant 0 : i32
    %c0_i32_1 = arith.constant 0 : i32
    return %c0_i32, %c0_i32_0 : i32, i32
  }
  func.func @transform_6(%arg0: i32) -> (i32, i32) {
    %c0_i32 = arith.constant 0 : i32
    %c0_i32_0 = arith.constant 0 : i32
    %c0_i32_1 = arith.constant 0 : i32
    return %c0_i32, %c0_i32_0 : i32, i32
  }
  func.func @transform_7(%arg0: i32) -> (i32, i32) {
    %c0_i32 = arith.constant 0 : i32
    %c0_i32_0 = arith.constant 0 : i32
    %c0_i32_1 = arith.constant 0 : i32
    return %c0_i32, %c0_i32_0 : i32, i32
  }
  func.func @transform_8(%arg0: i32) -> (i32, i32) {
    %c0_i32 = arith.constant 0 : i32
    %c0_i32_0 = arith.constant 0 : i32
    %c0_i32_1 = arith.constant 0 : i32
    return %c0_i32, %c0_i32_0 : i32, i32
  }
  func.func @transform_9(%arg0: i32) -> (i32, i32) {
    %c0_i32 = arith.constant 0 : i32
    %c0_i32_0 = arith.constant 0 : i32
    %c0_i32_1 = arith.constant 0 : i32
    return %c0_i32, %c0_i32_0 : i32, i32
  }
  func.func @transform_10(%arg0: i32) -> (i32, i32) {
    %c0_i32 = arith.constant 0 : i32
    %c0_i32_0 = arith.constant 0 : i32
    %c0_i32_1 = arith.constant 0 : i32
    return %c0_i32, %c0_i32_0 : i32, i32
  }
  func.func @transform_11(%arg0: i32) -> (i32, i32) {
    %c0_i32 = arith.constant 0 : i32
    %c0_i32_0 = arith.constant 0 : i32
    %c0_i32_1 = arith.constant 0 : i32
    return %c0_i32, %c0_i32_0 : i32, i32
  }
  func.func @transform_12(%arg0: i32) -> (i32, i32, i32) {
    %c0_i32 = arith.constant 0 : i32
    %c0_i32_0 = arith.constant 0 : i32
    %c0_i32_1 = arith.constant 0 : i32
    return %arg0, %c0_i32, %c0_i32_0 : i32, i32, i32
  }
}

module attributes {stable_mosaic.version = 11 : i64} {
  func.func @_final_kernel(%arg0: i32, %arg1: memref<1x8x128xf32, #tpu.memory_space<vmem>>, %arg2: memref<1x8x128xf32, #tpu.memory_space<vmem>>, %arg3: memref<480x128xf32, #tpu.memory_space<vmem>>, %arg4: memref<1x128xf32, #tpu.memory_space<vmem>>, %arg5: memref<1x8x128xf32, #tpu.memory_space<vmem>>) attributes {dimension_semantics = [#tpu.dimension_semantics<parallel>], iteration_bounds = array<i64: 2>, scalar_prefetch = 0 : i64, scratch_operands = 0 : i64, tpu.core_type = #tpu.core_type<tc>, window_params = [{transform_indices = @transform_0, window_bounds = array<i64: 1, 8, 128>}, {transform_indices = @transform_1, window_bounds = array<i64: 1, 8, 128>}, {pipeline_mode = #tpu.pipeline_mode<synchronous>, transform_indices = @transform_2, window_bounds = array<i64: 480, 128>}, {pipeline_mode = #tpu.pipeline_mode<synchronous>, transform_indices = @transform_3, window_bounds = array<i64: 1, 128>}, {transform_indices = @transform_4, window_bounds = array<i64: 1, 8, 128>}]} {
    %c0 = arith.constant 0 : index
    %c0_0 = arith.constant 0 : index
    %c0_1 = arith.constant 0 : index
    %0 = vector.load %arg1[%c0, %c0_0, %c0_1] : memref<1x8x128xf32, #tpu.memory_space<vmem>>, vector<1x8x128xf32>
    %1 = vector.shape_cast %0 : vector<1x8x128xf32> to vector<8x128xf32>
    %cst = arith.constant 0.000000e+00 : f32
    %2 = vector.broadcast %cst : f32 to vector<8x16xf32>
    %3 = tpu.concatenate %2, %1, %2 in 1 : vector<8x16xf32>, vector<8x128xf32>, vector<8x16xf32> -> vector<8x160xf32>
    %cst_2 = arith.constant 0.000000e+00 : f32
    %4 = vector.broadcast %cst_2 : f32 to vector<1x160xf32>
    %5 = tpu.concatenate %4, %3, %4 in 0 : vector<1x160xf32>, vector<8x160xf32>, vector<1x160xf32> -> vector<10x160xf32>
    %6 = vector.extract_strided_slice %5 {offsets = [0, 0], sizes = [8, 160], strides = [1, 1]} : vector<10x160xf32> to vector<8x160xf32>
    %7 = vector.extract_strided_slice %5 {offsets = [1, 0], sizes = [8, 160], strides = [1, 1]} : vector<10x160xf32> to vector<8x160xf32>
    %8 = vector.extract_strided_slice %5 {offsets = [2, 0], sizes = [8, 160], strides = [1, 1]} : vector<10x160xf32> to vector<8x160xf32>
    %9 = tpu.concatenate %6, %7, %8 in 1 : vector<8x160xf32>, vector<8x160xf32>, vector<8x160xf32> -> vector<8x480xf32>
    %c0_3 = arith.constant 0 : index
    %c0_4 = arith.constant 0 : index
    %10 = vector.load %arg3[%c0_3, %c0_4] : memref<480x128xf32, #tpu.memory_space<vmem>>, vector<480x128xf32>
    %cst_5 = arith.constant dense<0.000000e+00> : vector<8x128xf32>
    %11 = tpu.matmul %9, %10, %cst_5 {dimension_numbers = #tpu.dot_dimension_numbers<[1], [0], [0], [1], [0, 0, 1, 1], [], []>} : vector<8x480xf32>, vector<480x128xf32>, vector<8x128xf32> -> vector<8x128xf32>
    %c0_6 = arith.constant 0 : index
    %c0_7 = arith.constant 0 : index
    %12 = vector.load %arg4[%c0_6, %c0_7] : memref<1x128xf32, #tpu.memory_space<vmem>>, vector<1x128xf32>
    %13 = vector.broadcast %12 : vector<1x128xf32> to vector<8x128xf32>
    %14 = arith.addf %11, %13 : vector<8x128xf32>
    %c0_8 = arith.constant 0 : index
    %c0_9 = arith.constant 0 : index
    %c0_10 = arith.constant 0 : index
    %15 = vector.load %arg2[%c0_8, %c0_9, %c0_10] : memref<1x8x128xf32, #tpu.memory_space<vmem>>, vector<1x8x128xf32>
    %16 = vector.shape_cast %15 : vector<1x8x128xf32> to vector<8x128xf32>
    %17 = arith.addf %14, %16 : vector<8x128xf32>
    %c0_11 = arith.constant 0 : index
    %c0_12 = arith.constant 0 : index
    %c0_13 = arith.constant 0 : index
    %18 = vector.load %arg5[%c0_11, %c0_12, %c0_13] : memref<1x8x128xf32, #tpu.memory_space<vmem>>, vector<1x8x128xf32>
    %19 = vector.shape_cast %18 : vector<1x8x128xf32> to vector<8x128xf32>
    %20 = vector.shape_cast %17 : vector<8x128xf32> to vector<1x8x128xf32>
    tpu.vector_store %arg5[%c0_11, %c0_12, %c0_13], %20 {strides = array<i32>} : memref<1x8x128xf32, #tpu.memory_space<vmem>>, vector<1x8x128xf32>,
    return
  }
  func.func @transform_0(%arg0: i32) -> (i32, i32, i32) {
    %c0_i32 = arith.constant 0 : i32
    %c0_i32_0 = arith.constant 0 : i32
    %c0_i32_1 = arith.constant 0 : i32
    return %arg0, %c0_i32, %c0_i32_0 : i32, i32, i32
  }
  func.func @transform_1(%arg0: i32) -> (i32, i32, i32) {
    %c0_i32 = arith.constant 0 : i32
    %c0_i32_0 = arith.constant 0 : i32
    %c0_i32_1 = arith.constant 0 : i32
    return %arg0, %c0_i32, %c0_i32_0 : i32, i32, i32
  }
  func.func @transform_2(%arg0: i32) -> (i32, i32) {
    %c0_i32 = arith.constant 0 : i32
    %c0_i32_0 = arith.constant 0 : i32
    %c0_i32_1 = arith.constant 0 : i32
    return %c0_i32, %c0_i32_0 : i32, i32
  }
  func.func @transform_3(%arg0: i32) -> (i32, i32) {
    %c0_i32 = arith.constant 0 : i32
    %c0_i32_0 = arith.constant 0 : i32
    %c0_i32_1 = arith.constant 0 : i32
    return %c0_i32, %c0_i32_0 : i32, i32
  }
  func.func @transform_4(%arg0: i32) -> (i32, i32, i32) {
    %c0_i32 = arith.constant 0 : i32
    %c0_i32_0 = arith.constant 0 : i32
    %c0_i32_1 = arith.constant 0 : i32
    return %arg0, %c0_i32, %c0_i32_0 : i32, i32, i32
  }
}

</mosaic_0001>

<bundles_post_ra>
// kernel: rg_forward.3
= control target key start
LH: loop header
LB: loop body
LE: loop exit
PB: predicated region body
PF: predicated region fallthrough
CT: control target
= control target key end

     0   :  { %s2439_s21 = smov 0   ;;  %s3385_s0 = inlined_call_operand.vmem [shape: f32[2,8,128], index: 0, kind: input, shape index: {}]   ;;  %s3386_s1 = inlined_call_operand.vmem [shape: f32[480,128], index: 1, kind: input, shape index: {}]   ;;  %s3387_s2 = inlined_call_operand.vmem [shape: f32[1,128], index: 2, kind: input, shape index: {}]   ;;  %s3388_s3 = inlined_call_operand.vmem [shape: f32[480,128], index: 3, kind: input, shape index: {}]   ;;  %s3389_s4 = inlined_call_operand.vmem [shape: f32[1,128], index: 4, kind: input, shape index: {}]   ;;  %s3390_s5 = inlined_call_operand.vmem [shape: f32[16,4], index: 5, kind: input, shape index: {}]   ;;  %s3391_s6 = inlined_call_operand.vmem [shape: f32[1,4], index: 6, kind: input, shape index: {}]   ;;  %s3392_s7 = inlined_call_operand.vmem [shape: f32[4,16], index: 7, kind: input, shape index: {}]   ;;  %s3393_s8 = inlined_call_operand.vmem [shape: f32[1,16], index: 8, kind: input, shape index: {}]   ;;  %s3394_s9 = inlined_call_operand.vmem [shape: f32[480,128], index: 9, kind: input, shape index: {}]   ;;  %s3395_s10 = inlined_call_operand.vmem [shape: f32[1,128], index: 10, kind: input, shape index: {}]   ;;  %s3396_s11 = inlined_call_operand.vmem [shape: f32[196,8], index: 11, kind: input, shape index: {}]   ;;  %s3397_s12 = inlined_call_operand.vmem [shape: f32[2,8,128], index: 12, kind: output, shape index: {}]  }
   0x1 LB: > { %s1861_s22 = sadd.s32 4294967295, %s2341_s21   ;;  %p1865_p0 = scmp.ge.s32.totalorder %s2341_s21, 1  ;;  %s2341_s21 = sphi %s2439_s21, %s22_s21  }
   0x2   : > { %p361_p1 = scmp.lt.s32.totalorder %s2341_s21, 3 }
   0x4   : > { %p362_p2 = pnand %p1865_p0, %p361_p1 }
   0x5   : > { %p401_p3 = scmp.lt.s32.totalorder (!%p362_p2), %s1861_s22, 1  ;;  %v495_v1 = vld [vmem:[%s3386_s1 + $0x100] sm:$0xff] (!%p362_p2)  ;;  %v496_v2 = vld [vmem:[%s3386_s1 + $0x108] sm:$0xff] (!%p362_p2)  ;;  %s2343_s13 = smov (!%p362_p2), 16   ;;  %v2344_v3 = vmov (!%p362_p2), 0.0|0.0   ;;  %v497_v5 = vld [vmem:[%s3386_s1 + $0x110] sm:$0xff] (!%p362_p2) }
   0x6   : > { %365 = sbr.rel (%p362_p2) target bundleno = 3123 (0xc33), region = 68  ;;  %2041 = vmatprep.subr.bf16.mxu1 (!%p362_p2), %v2344_v3  ;;  %v2042_v4 = vpack.c.bf16 (!%p362_p2), %v496_v2, %v495_v1  ;;  %v498_v6 = vld [vmem:[%s3386_s1 + $0x118] sm:$0xff] (!%p362_p2)  ;;  %v499_v8 = vld [vmem:[%s3386_s1 + $0x120] sm:$0xff] (!%p362_p2)  ;;  %v500_v9 = vld [vmem:[%s3386_s1 + $0x128] sm:$0xff] (!%p362_p2)  ;;  %vm414_vm0 = vcmask (!%p362_p2), 130048   ;;  %vm423_vm1 = vcmask (!%p362_p2), 1040384  }
   0x7   : > { %v2045_v7 = vpack.c.bf16 (!%p362_p2), %v498_v6, %v497_v5  ;;  %v479_v10 = vld [vmem:[%s3386_s1 + $0x80] sm:$0xff] (!%p362_p2)  ;;  %v480_v11 = vld [vmem:[%s3386_s1 + $0x88] sm:$0xff] (!%p362_p2)  ;;  %v481_v16 = vld [vmem:[%s3386_s1 + $0x90] sm:$0xff] (!%p362_p2)  ;;  %v2048_v18 = vpack.c.bf16 (!%p362_p2), %v500_v9, %v499_v8  ;;  %vm432_vm2 = vcmask (!%p362_p2), 1046528   ;;  %vm447_vm3 = vcmask (!%p362_p2), 1045504   ;;  %s2345_s18 = smov (!%p362_p2), 64  }
   0x8   : > { %2043 = vmatpush1.bf16.msra.mxu1 (!%p362_p2), %v2042_v4  ;;  %v2009_v12 = vpack.c.bf16 (!%p362_p2), %v480_v11, %v479_v10  ;;  %v463_v13 = vld [vmem:[%s3386_s1] sm:$0xff] (!%p362_p2)  ;;  %v464_v14 = vld [vmem:[%s3386_s1 + $0x8] sm:$0xff] (!%p362_p2)  ;;  %v482_v17 = vld [vmem:[%s3386_s1 + $0x98] sm:$0xff] (!%p362_p2)  ;;  %s2346_s19 = smov (!%p362_p2), 32   ;;  %vm443_vm4 = vcmask (!%p362_p2), 261120   ;;  %vm458_vm5 = vcmask (!%p362_p2), 523264  }
   0x9   : > { %2044 = vmatprep.subr.bf16.mxu1 (!%p362_p2), %v2344_v3  ;;  %v2011_v15 = vpack.c.bf16 (!%p362_p2), %v464_v14, %v463_v13  ;;  %v501_v19 = vld [vmem:[%s3386_s1 + $0x130] sm:$0xff] (!%p362_p2)  ;;  %v2013_v20 = vpack.c.bf16 (!%p362_p2), %v482_v17, %v481_v16  ;;  %v466_v22 = vld [vmem:[%s3386_s1 + $0x18] sm:$0xff] (!%p362_p2)  ;;  %v483_v25 = vld [vmem:[%s3386_s1 + $0xa0] sm:$0xff] (!%p362_p2)  ;;  %vm3400_vm6 = vcmask (!%p362_p2), 785408   ;;  %s2347_s14 = smov (!%p362_p2), 96   ;;  %s2348_s15 = smov (!%p362_p2), 112  }
   0xa   : > { %2010 = vmatprep.subr.bf16.mxu0 (!%p362_p2), %v2009_v12  ;;  %v465_v21 = vld [vmem:[%s3386_s1 + $0x10] sm:$0xff] (!%p362_p2)  ;;  %v502_v23 = vld [vmem:[%s3386_s1 + $0x138] sm:$0xff] (!%p362_p2)  ;;  %v484_v26 = vld [vmem:[%s3386_s1 + $0xa8] sm:$0xff] (!%p362_p2)  ;;  %vm2349_vm8 = vmmov (!%p362_p2), 0   ;;  %s2351_s16 = smov (!%p362_p2), 80   ;;  %s3399_s17 = smov (!%p362_p2), 48  }
   0xb   : > { %2012 = vmatpush3.bf16.msra.mxu0 (!%p362_p2), %v2011_v15  ;;  %v2015_v24 = vpack.c.bf16 (!%p362_p2), %v466_v22, %v465_v21  ;;  %v2017_v27 = vpack.c.bf16 (!%p362_p2), %v484_v26, %v483_v25  ;;  %v467_v28 = vld [vmem:[%s3386_s1 + $0x20] sm:$0xff] (!%p362_p2)  ;;  %v468_v29 = vld [vmem:[%s3386_s1 + $0x28] sm:$0xff] (!%p362_p2)  ;;  %v485_v30 = vld [vmem:[%s3386_s1 + $0xb0] sm:$0xff] (!%p362_p2)  ;;  %v2051_v32 = vpack.c.bf16 (!%p362_p2), %v502_v23, %v501_v19  ;;  %vm1049_vm9 = vcmask (!%p362_p2), 1043456   ;;  %s3404_s20 = smov (!%p362_p2), 48   ;;  %s2355_s29 = smov (!%p362_p2), 12  }
   0xc   : > { %2046 = vmatpush1.bf16.msra.mxu1 (!%p362_p2), %v2045_v7  ;;  %2014 = vmatprep.subr.bf16.mxu0 (!%p362_p2), %v2013_v20  ;;  %v486_v31 = vld [vmem:[%s3386_s1 + $0xb8] sm:$0xff] (!%p362_p2)  ;;  %v503_v33 = vld [vmem:[%s3386_s1 + $0x140] sm:$0xff] (!%p362_p2)  ;;  %v504_v34 = vld [vmem:[%s3386_s1 + $0x148] sm:$0xff] (!%p362_p2)  ;;  %v2019_v35 = vpack.c.bf16 (!%p362_p2), %v468_v29, %v467_v28  ;;  %vm1045_vm10 = vcmask (!%p362_p2), 31744   ;;  %vm1152_vm11 = vcmask (!%p362_p2), 392192   ;;  %vm3401_vm12 = vcmask (!%p362_p2), 654336  }
   0xd   : > { %s3409_s22 = smov (!%p401_p3, %s1861_s22), 1  ;;  %2047 = vmatprep.subr.bf16.mxu1 %v2344_v3  ;;  %v2021_v36 = vpack.c.bf16 %v486_v31, %v485_v30  ;;  %v469_v37 = vld [vmem:[%s3386_s1 + $0x30] sm:$0xff]  ;;  %v470_v38 = vld [vmem:[%s3386_s1 + $0x38] sm:$0xff]  ;;  %v487_v39 = vld [vmem:[%s3386_s1 + $0xc0] sm:$0xff]  ;;  %v2054_v41 = vpack.c.bf16 %v504_v34, %v503_v33  ;;  %vm1158_vm13 = vcmask 916480   ;;  %vm1460_vm14 = vcmask 523648  }
   0xe   : > { %s3398_s23 = sshll.u32 %s3409_s22, 3  ;;  %v488_v40 = vld [vmem:[%s3386_s1 + $0xc8] sm:$0xff]  ;;  %v505_v42 = vld [vmem:[%s3386_s1 + $0x150] sm:$0xff]  ;;  %v506_v43 = vld [vmem:[%s3386_s1 + $0x158] sm:$0xff]  ;;  %v2023_v44 = vpack.c.bf16 %v470_v38, %v469_v37  ;;  %vm1438_vm15 = vcmask 261248   ;;  %s2358_s27 = smov 14  }
   0xf   : > { %s404_s26 = scalar_lea.vmem %s3385_s0, %s3398_s23  ;;  %2016 = vmatpush3.bf16.msra.mxu0 %v2015_v24  ;;  %v2025_v45 = vpack.c.bf16 %v488_v40, %v487_v39  ;;  %v471_v46 = vld [vmem:[%s3386_s1 + $0x40] sm:$0xff]  ;;  %v472_v47 = vld [vmem:[%s3386_s1 + $0x48] sm:$0xff]  ;;  %v489_v48 = vld [vmem:[%s3386_s1 + $0xd0] sm:$0xff]  ;;  %v2057_v50 = vpack.c.bf16 %v506_v43, %v505_v42  ;;  %s2359_s28 = smov 40  }
  0x10   : > { %v409_v0 = vld [vmem:[%s404_s26] sm:$0xff]  ;;  %2049 = vmatpush1.bf16.msra.mxu1 %v2048_v18  ;;  %2018 = vmatprep.subr.bf16.mxu0 %v2017_v27  ;;  %v490_v49 = vld [vmem:[%s3386_s1 + $0xd8] sm:$0xff]  ;;  %v508_v52 = vld [vmem:[%s3386_s1 + $0x168] sm:$0xff]  ;;  %v2027_v53 = vpack.c.bf16 %v472_v47, %v471_v46  ;;  %s2354_s26 = smov 98   ;;  %s2360_s23 = smov 28  }
  0x11   : > { %411 = vrot.lane.b32.xlu0 %v409_v0, %s2343_s13  ;;  %2050 = vmatprep.subr.bf16.mxu1 %v2344_v3  ;;  %v507_v51 = vld [vmem:[%s3386_s1 + $0x160] sm:$0xff]  ;;  %v2029_v54 = vpack.c.bf16 %v490_v49, %v489_v48  ;;  %v473_v55 = vld [vmem:[%s3386_s1 + $0x50] sm:$0xff]  ;;  %v474_v56 = vld [vmem:[%s3386_s1 + $0x58] sm:$0xff] }
  0x12   : > { %v491_v57 = vld [vmem:[%s3386_s1 + $0xe0] sm:$0xff]  ;;  %v492_v58 = vld [vmem:[%s3386_s1 + $0xe8] sm:$0xff]  ;;  %v2060_v59 = vpack.c.bf16 %v508_v52, %v507_v51  ;;  %v509_v60 = vld [vmem:[%s3386_s1 + $0x170] sm:$0xff]  ;;  %v2031_v62 = vpack.c.bf16 %v474_v56, %v473_v55 }
  0x13   : > { %2020 = vmatpush3.bf16.msra.mxu0 %v2019_v35  ;;  %v510_v61 = vld [vmem:[%s3386_s1 + $0x178] sm:$0xff]  ;;  %v2033_v63 = vpack.c.bf16 %v492_v58, %v491_v57  ;;  %v475_v0 = vld [vmem:[%s3386_s1 + $0x60] sm:$0xff]  ;;  %v476_v1 = vld [vmem:[%s3386_s1 + $0x68] sm:$0xff] }
  0x14   : > { %2052 = vmatpush1.bf16.msra.mxu1 %v2051_v32  ;;  %2022 = vmatprep.subr.bf16.mxu0 %v2021_v36  ;;  %v2063_v2 = vpack.c.bf16 %v510_v61, %v509_v60  ;;  %v511_v4 = vld [vmem:[%s3386_s1 + $0x180] sm:$0xff]  ;;  %v512_v5 = vld [vmem:[%s3386_s1 + $0x188] sm:$0xff]  ;;  %v2035_v6 = vpack.c.bf16 %v476_v1, %v475_v0  ;;  %v513_v8 = vld [vmem:[%s3386_s1 + $0x190] sm:$0xff] }
  0x15   : > { %2053 = vmatprep.subr.bf16.mxu1 %v2344_v3  ;;  %v2066_v7 = vpack.c.bf16 %v512_v5, %v511_v4  ;;  %v514_v9 = vld [vmem:[%s3386_s1 + $0x198] sm:$0xff]  ;;  %v515_v11 = vld [vmem:[%s3386_s1 + $0x1a0] sm:$0xff]  ;;  %v516_v12 = vld [vmem:[%s3386_s1 + $0x1a8] sm:$0xff] }
  0x16   : > { %v2069_v10 = vpack.c.bf16 %v514_v9, %v513_v8  ;;  %v2072_v13 = vpack.c.bf16 %v516_v12, %v515_v11  ;;  %v517_v14 = vld [vmem:[%s3386_s1 + $0x1b0] sm:$0xff]  ;;  %v518_v15 = vld [vmem:[%s3386_s1 + $0x1b8] sm:$0xff]  ;;  %v519_v17 = vld [vmem:[%s3386_s1 + $0x1c0] sm:$0xff] }
  0x17   : > { %2024 = vmatpush3.bf16.msra.mxu0 %v2023_v44  ;;  %v2075_v16 = vpack.c.bf16 %v518_v15, %v517_v14  ;;  %v520_v18 = vld [vmem:[%s3386_s1 + $0x1c8] sm:$0xff]  ;;  %v493_v20 = vld [vmem:[%s3386_s1 + $0xf0] sm:$0xff]  ;;  %v494_v21 = vld [vmem:[%s3386_s1 + $0xf8] sm:$0xff] }
  0x18   : > { %2055 = vmatpush1.bf16.msra.mxu1 %v2054_v41  ;;  %2026 = vmatprep.subr.bf16.mxu0 %v2025_v45  ;;  %v2078_v19 = vpack.c.bf16 %v520_v18, %v519_v17  ;;  %v2037_v22 = vpack.c.bf16 %v494_v21, %v493_v20  ;;  %v477_v23 = vld [vmem:[%s3386_s1 + $0x70] sm:$0xff]  ;;  %v478_v24 = vld [vmem:[%s3386_s1 + $0x78] sm:$0xff]  ;;  %vm2665_vm7 = vmneg %vm423_vm1 }
  0x19   : > { %2056 = vmatprep.subr.bf16.mxu1 %v2344_v3  ;;  %v521_v25 = vld [vmem:[%s3386_s1 + $0x1d0] sm:$0xff]  ;;  %v2039_v26 = vpack.c.bf16 %v478_v24, %v477_v23  ;;  %v522_v27 = vld [vmem:[%s3386_s1 + $0x1d8] sm:$0xff]  ;;  %v754_v8 = vld [vmem:[%s3388_s3 + $0x108] sm:$0xff] }
  0x1a   : > { %v2081_v28 = vpack.c.bf16 %v522_v27, %v521_v25  ;;  %v755_v9 = vld [vmem:[%s3388_s3 + $0x110] sm:$0xff]  ;;  %v756_v11 = vld [vmem:[%s3388_s3 + $0x118] sm:$0xff]  ;;  %v758_v14 = vld [vmem:[%s3388_s3 + $0x128] sm:$0xff] }
  0x1b   : > { %2028 = vmatpush3.bf16.msra.mxu0 %v2027_v53  ;;  %v2119_v12 = vpack.c.bf16 %v756_v11, %v755_v9  ;;  %v737_v15 = vld [vmem:[%s3388_s3 + $0x80] sm:$0xff]  ;;  %v739_v21 = vld [vmem:[%s3388_s3 + $0x90] sm:$0xff]  ;;  %v724_v27 = vld [vmem:[%s3388_s3 + $0x18] sm:$0xff] }
  0x1c   : > { %2058 = vmatpush1.bf16.msra.mxu1 %v2057_v50  ;;  %2030 = vmatprep.subr.bf16.mxu0 %v2029_v54  ;;  %v721_v17 = vld [vmem:[%s3388_s3] sm:$0xff]  ;;  %v723_v23 = vld [vmem:[%s3388_s3 + $0x10] sm:$0xff]  ;;  %v734_v9 = vld [vmem:[%s3388_s3 + $0x68] sm:$0xff] }
  0x1d   : > { %2059 = vmatprep.subr.bf16.mxu1 %v2344_v3  ;;  %v759_v25 = vld [vmem:[%s3388_s3 + $0x130] sm:$0xff]  ;;  %v769_v11 = vld [vmem:[%s3388_s3 + $0x180] sm:$0xff] }
  0x1f   : > { %2032 = vmatpush3.bf16.msra.mxu0 %v2031_v62 }
  0x20   : > { %2061 = vmatpush1.bf16.msra.mxu1 %v2060_v59  ;;  %2034 = vmatprep.subr.bf16.mxu0 %v2033_v63  ;;  %v1868_v63 = vld [vmem:[%s3387_s2] ss:$0 sm:$0xff] }
  0x21   : > { %2062 = vmatprep.subr.bf16.mxu1 %v2344_v3 }
  0x23   : > { %2036 = vmatpush3.bf16.msra.mxu0 %v2035_v6 }
  0x24   : > { %2064 = vmatpush1.bf16.msra.mxu1 %v2063_v2  ;;  %2038 = vmatprep.subr.bf16.mxu0 %v2037_v22  ;;  %v740_v22 = vld [vmem:[%s3388_s3 + $0x98] sm:$0xff] }
  0x25   : > { %2065 = vmatprep.subr.bf16.mxu1 %v2344_v3 }
  0x27   : > { %2040 = vmatpush3.bf16.msra.mxu0 %v2039_v26  ;;  %v2087_v26 = vpack.c.bf16 %v740_v22, %v739_v21  ;;  %v775_v21 = vld [vmem:[%s3388_s3 + $0x1b0] sm:$0xff]  ;;  %v776_v22 = vld [vmem:[%s3388_s3 + $0x1b8] sm:$0xff] }
  0x28   : > { %2067 = vmatpush1.bf16.msra.mxu1 %v2066_v7  ;;  %v753_v7 = vld [vmem:[%s3388_s3 + $0x100] sm:$0xff] }
  0x29   : > { %2068 = vmatprep.subr.bf16.mxu1 %v2344_v3 }
  0x2c   : > { %2070 = vmatpush1.bf16.msra.mxu1 %v2069_v10  ;;  %v2116_v10 = vpack.c.bf16 %v754_v8, %v753_v7  ;;  %v733_v8 = vld [vmem:[%s3388_s3 + $0x60] sm:$0xff] }
  0x2d   : > { %2071 = vmatprep.subr.bf16.mxu1 %v2344_v3 }
  0x30   : > { %2073 = vmatpush1.bf16.msra.mxu1 %v2072_v13  ;;  %v757_v13 = vld [vmem:[%s3388_s3 + $0x120] sm:$0xff] }
  0x31   : > { %2074 = vmatprep.subr.bf16.mxu1 %v2344_v3  ;;  %v2122_v24 = vpack.c.bf16 %v758_v14, %v757_v13  ;;  %v2109_v13 = vpack.c.bf16 %v734_v9, %v733_v8  ;;  %v1872_v8 = vld [vmem:[%s3389_s4] ss:$0 sm:$0xff] }
  0x34   : > { %2076 = vmatpush1.bf16.msra.mxu1 %v2075_v16  ;;  %v738_v16 = vld [vmem:[%s3388_s3 + $0x88] sm:$0xff] }
  0x35   : > { %2077 = vmatprep.subr.bf16.mxu1 %v2344_v3  ;;  %v2083_v18 = vpack.c.bf16 %v738_v16, %v737_v15  ;;  %v771_v15 = vld [vmem:[%s3388_s3 + $0x190] sm:$0xff]  ;;  %v772_v16 = vld [vmem:[%s3388_s3 + $0x198] sm:$0xff] }
  0x37   : > { %2084 = vmatprep.subr.bf16.mxu0 %v2083_v18  ;;  %v773_v18 = vld [vmem:[%s3388_s3 + $0x1a0] sm:$0xff] }
  0x38   : > { %2079 = vmatpush1.bf16.msra.mxu1 %v2078_v19  ;;  %v722_v19 = vld [vmem:[%s3388_s3 + $0x8] sm:$0xff] }
  0x39   : > { %2080 = vmatprep.subr.bf16.mxu1 %v2344_v3  ;;  %v2085_v20 = vpack.c.bf16 %v722_v19, %v721_v17  ;;  %v2143_v17 = vpack.c.bf16 %v772_v16, %v771_v15  ;;  %v774_v19 = vld [vmem:[%s3388_s3 + $0x1a8] sm:$0xff] }
  0x3c   : > { %2082 = vmatpush1.bf16.msra.mxu1 %v2081_v28  ;;  %v760_v28 = vld [vmem:[%s3388_s3 + $0x138] sm:$0xff] }
  0x3d   : > { %2115 = vmatprep.subr.bf16.mxu1 %v2344_v3 }
  0x83   : > { %v412_v29 = vpop.permute.xlu0 %411 }
  0x84   : > { %v415_v30 = vsel %vm414_vm0, 0.0, %v412_v29  ;;  %v416_v31 = vsel %vm414_vm0, %v412_v29, 0.0  ;;  %v2089_v29 = vpack.c.bf16 %v724_v27, %v723_v23  ;;  %v2149_v23 = vpack.c.bf16 %v776_v22, %v775_v21  ;;  %v751_v27 = vld [vmem:[%s3388_s3 + $0xf0] sm:$0xff]  ;;  %v967_v21 = vld [vmem:[%s3390_s5 + $0x8] sm:$0xff] }
  0x85   : > { %v419_v32 = vrot.slane %v415_v30, 7  ;;  %v420_v33 = vrot.slane %v416_v31, 7  ;;  %v741_v30 = vld [vmem:[%s3388_s3 + $0xa0] sm:$0xff]  ;;  %v742_v31 = vld [vmem:[%s3388_s3 + $0xa8] sm:$0xff] }
  0x87   : > { %v425_v34 = vsel %vm423_vm1, 0.0, %v420_v33  ;;  %v427_v35 = vsel %vm423_vm1, %v420_v33, 0.0  ;;  %v424_v36 = vsel %vm423_vm1, 0.0, %v419_v32  ;;  %v426_v37 = vsel %vm423_vm1, %v419_v32, 0.0  ;;  %v725_v33 = vld [vmem:[%s3388_s3 + $0x20] sm:$0xff] }
  0x88   : > { %v436_v38 = vrot.slane %v425_v34, 1  ;;  %v437_v39 = vrot.slane %v427_v35, 1  ;;  %v434_v40 = vrot.slane %v426_v37, 1  ;;  %v448_v41 = vrot.slane %v424_v36, 2 }
  0x89   : > { %v449_v42 = vrot.slane %v426_v37, 2  ;;  %v433_v43 = vrot.slane %v424_v36, 1  ;;  %v452_v45 = vrot.slane %v427_v35, 2  ;;  %v451_v48 = vrot.slane %v425_v34, 2  ;;  %v743_v35 = vld [vmem:[%s3388_s3 + $0xb0] sm:$0xff]  ;;  %v744_v36 = vld [vmem:[%s3388_s3 + $0xb8] sm:$0xff] }
  0x8a   : > { %v438_v44 = vsel %vm432_vm2, %v436_v38, %v437_v39  ;;  %v2125_v37 = vpack.c.bf16 %v760_v28, %v759_v25  ;;  %v761_v38 = vld [vmem:[%s3388_s3 + $0x140] sm:$0xff]  ;;  %v762_v39 = vld [vmem:[%s3388_s3 + $0x148] sm:$0xff]  ;;  %v752_v28 = vld [vmem:[%s3388_s3 + $0xf8] sm:$0xff] }
  0x8b   : > { %v450_v46 = vsel %vm447_vm3, %v448_v41, %v449_v42  ;;  %v435_v47 = vsel %vm432_vm2, %v433_v43, %v434_v40  ;;  %v453_v50 = vsel %vm447_vm3, %v451_v48, %v452_v45  ;;  %v2095_v41 = vpack.c.bf16 %v744_v36, %v743_v35  ;;  %v727_v42 = vld [vmem:[%s3388_s3 + $0x30] sm:$0xff]  ;;  %v728_v43 = vld [vmem:[%s3388_s3 + $0x38] sm:$0xff]  ;;  %v746_v45 = vld [vmem:[%s3388_s3 + $0xc8] sm:$0xff] }
  0x8c   : > { %454 = vrot.lane.b32.xlu1 %v450_v46, %s2345_s18  ;;  %v2309_v49 = vpack.i.bf16 %v438_v44, %v435_v47  ;;  %v745_v44 = vld [vmem:[%s3388_s3 + $0xc0] sm:$0xff]  ;;  %v2128_v46 = vpack.c.bf16 %v762_v39, %v761_v38  ;;  %v763_v47 = vld [vmem:[%s3388_s3 + $0x150] sm:$0xff]  ;;  %v764_v48 = vld [vmem:[%s3388_s3 + $0x158] sm:$0xff] }
  0x8d   : > { %v778_v25 = vld [vmem:[%s3388_s3 + $0x1c8] sm:$0xff] }
  0x8e   : > { %2310 = vrot.lane.b32.xlu0 %v2309_v49, %s2346_s19  ;;  %v2097_v49 = vpack.c.bf16 %v728_v43, %v727_v42 }
  0x90   : > { %456 = vrot.lane.b32.xlu1 %v453_v50, %s2345_s18  ;;  %v2099_v50 = vpack.c.bf16 %v746_v45, %v745_v44 }
  0xfe   : > { %v455_v51 = vpop.permute.xlu1 %454 }
 0x100   : > { %v2311_v52 = vpop.permute.xlu0 %2310 }
 0x101   : > { %v2313_v53 = vunpack.i.h.bf16 %v2311_v52  ;;  %v2312_v54 = vunpack.i.l.bf16 %v2311_v52  ;;  %v730_v52 = vld [vmem:[%s3388_s3 + $0x48] sm:$0xff] }
 0x102   : > { %v457_v55 = vpop.permute.xlu1 %456 }
 0x103   : > { %v461_v57 = vsel %vm443_vm4, %v425_v34, %v2312_v54  ;;  %v459_v58 = vsel %vm458_vm5, %v455_v51, %v457_v55  ;;  %v444_v59 = vsel %vm443_vm4, %v2312_v54, %v2313_v53  ;;  %v726_v34 = vld [vmem:[%s3388_s3 + $0x28] sm:$0xff]  ;;  %v747_v53 = vld [vmem:[%s3388_s3 + $0xd0] sm:$0xff]  ;;  %v748_v54 = vld [vmem:[%s3388_s3 + $0xd8] sm:$0xff]  ;;  %v2131_v55 = vpack.c.bf16 %v764_v48, %v763_v47 }
 0x104   : > { %597 = vmatprep.mubr.f32.mxu0 %v461_v57  ;;  %1871 = vmatprep.mubr.msk.f32.mxu1 %vm3400_vm6, %v459_v58  ;;  %v462_v60 = vsel %vm458_vm5, %v444_v59, %v455_v51  ;;  %v2093_v40 = vpack.c.bf16 %v726_v34, %v725_v33  ;;  %v729_v51 = vld [vmem:[%s3388_s3 + $0x40] sm:$0xff]  ;;  %v766_v58 = vld [vmem:[%s3388_s3 + $0x168] sm:$0xff]  ;;  %v779_v33 = vld [vmem:[%s3388_s3 + $0x1d0] sm:$0xff] }
 0x105   : > { %1870 = vmatmul.mubr.msk.f32.vlgmr.msra.gmra.mrb[0].mxu0 %vm2665_vm7, %v419_v32  ;;  %668 = vmatmul.mubr.f32.vlgmr.msra.gmra.mrb[0].mxu1 %v462_v60  ;;  %v2091_v32 = vpack.c.bf16 %v742_v31, %v741_v30  ;;  %v765_v57 = vld [vmem:[%s3388_s3 + $0x160] sm:$0xff]  ;;  %v2101_v59 = vpack.c.bf16 %v730_v52, %v729_v51  ;;  %v2103_v60 = vpack.c.bf16 %v748_v54, %v747_v53  ;;  %v735_v30 = vld [vmem:[%s3388_s3 + $0x70] sm:$0xff]  ;;  %v736_v31 = vld [vmem:[%s3388_s3 + $0x78] sm:$0xff] }
 0x106   : > { %2117 = vmatpush1.bf16.msra.mxu1 %v2116_v10  ;;  %2086 = vmatpush3.bf16.msra.mxu0 %v2085_v20  ;;  %v2146_v20 = vpack.c.bf16 %v774_v19, %v773_v18  ;;  %v780_v34 = vld [vmem:[%s3388_s3 + $0x1d8] sm:$0xff] }
 0x107   : > { %2118 = vmatprep.subr.bf16.mxu1 %v2344_v3  ;;  %2088 = vmatprep.subr.bf16.mxu0 %v2087_v26  ;;  %v2155_v35 = vpack.c.bf16 %v780_v34, %v779_v33 }
 0x10a   : > { %2120 = vmatpush1.bf16.msra.mxu1 %v2119_v12  ;;  %2090 = vmatpush3.bf16.msra.mxu0 %v2089_v29  ;;  %v770_v12 = vld [vmem:[%s3388_s3 + $0x188] sm:$0xff]  ;;  %v2111_v29 = vpack.c.bf16 %v752_v28, %v751_v27 }
 0x10b   : > { %2121 = vmatprep.subr.bf16.mxu1 %v2344_v3  ;;  %2092 = vmatprep.subr.bf16.mxu0 %v2091_v32  ;;  %v2140_v14 = vpack.c.bf16 %v770_v12, %v769_v11  ;;  %v2113_v32 = vpack.c.bf16 %v736_v31, %v735_v30 }
 0x10e   : > { %2123 = vmatpush1.bf16.msra.mxu1 %v2122_v24  ;;  %2094 = vmatpush3.bf16.msra.mxu0 %v2093_v40  ;;  %v777_v24 = vld [vmem:[%s3388_s3 + $0x1c0] sm:$0xff] }
 0x10f   : > { %2124 = vmatprep.subr.bf16.mxu1 %v2344_v3  ;;  %2096 = vmatprep.subr.bf16.mxu0 %v2095_v41  ;;  %v2152_v26 = vpack.c.bf16 %v778_v25, %v777_v24 }
 0x112   : > { %2126 = vmatpush1.bf16.msra.mxu1 %v2125_v37  ;;  %2098 = vmatpush3.bf16.msra.mxu0 %v2097_v49 }
 0x113   : > { %2127 = vmatprep.subr.bf16.mxu1 %v2344_v3  ;;  %2100 = vmatprep.subr.bf16.mxu0 %v2099_v50 }
 0x116   : > { %2129 = vmatpush1.bf16.msra.mxu1 %v2128_v46  ;;  %2102 = vmatpush3.bf16.msra.mxu0 %v2101_v59 }
 0x117   : > { %2130 = vmatprep.subr.bf16.mxu1 %v2344_v3  ;;  %2104 = vmatprep.subr.bf16.mxu0 %v2103_v60 }
 0x11a   : > { %2132 = vmatpush1.bf16.msra.mxu1 %v2131_v55 }
 0x11b   : > { %2133 = vmatprep.subr.bf16.mxu1 %v2344_v3 }
 0x1d8   : > { %v1919_v61 = vpop.f32.mrb[0].mxu0  ;;  %v669_v62 = vpop.f32.mrb[0].mxu1 }
 0x1d9   : > { %v1920_v0 = vpop.f32.mrb[1].mxu0  ;;  %v671_v1 = vpop.f32.mrb[1].mxu1 }
 0x1da   : > { %v1921_v2 = vadd.f32 %v1920_v0, %v1919_v61  ;;  %v731_v61 = vld [vmem:[%s3388_s3 + $0x50] sm:$0xff]  ;;  %v750_v0 = vld [vmem:[%s3388_s3 + $0xe8] sm:$0xff]  ;;  %v2134_v1 = vpack.c.bf16 %v766_v58, %v765_v57 }
 0x1dc   : > { %v600_v4 = vadd.f32 %v1921_v2, %v1868_v63  ;;  %v749_v63 = vld [vmem:[%s3388_s3 + $0xe0] sm:$0xff]  ;;  %v767_v2 = vld [vmem:[%s3388_s3 + $0x170] sm:$0xff]  ;;  %2135 = vmatpush1.bf16.msra.mxu1 %v2134_v1 }
 0x1dd   : > { %v2107_v7 = vpack.c.bf16 %v750_v0, %v749_v63  ;;  %2136 = vmatprep.subr.bf16.mxu1 %v2344_v3 }
 0x1de   : > { %v2679_v5 = vadd.f32 %v669_v62, %v600_v4  ;;  %v732_v62 = vld [vmem:[%s3388_s3 + $0x58] sm:$0xff] }
 0x1df   : > { %v768_v4 = vld [vmem:[%s3388_s3 + $0x178] sm:$0xff] }
 0x1e0   : > { %v673_v6 = vmax.f32 %v2679_v5, 0.0  ;;  %v2137_v10 = vpack.c.bf16 %v768_v4, %v767_v2 }
 0x1e2   : > { %675 = vrot.lane.b32.xlu0 %v673_v6, %s2343_s13  ;;  %v2105_v6 = vpack.c.bf16 %v732_v62, %v731_v61  ;;  %2138 = vmatpush1.bf16.msra.mxu1 %v2137_v10 }
 0x1e3   : > { %2139 = vmatprep.subr.bf16.mxu1 %v2344_v3 }
 0x1e4   : > { %2106 = vmatpush3.bf16.msra.mxu0 %v2105_v6 }
 0x1e5   : > { %2108 = vmatprep.subr.bf16.mxu0 %v2107_v7 }
 0x1e6   : > { %2141 = vmatpush1.bf16.msra.mxu1 %v2140_v14 }
 0x1e7   : > { %2142 = vmatprep.subr.bf16.mxu1 %v2344_v3 }
 0x1e8   : > { %2110 = vmatpush3.bf16.msra.mxu0 %v2109_v13 }
 0x1e9   : > { %2112 = vmatprep.subr.bf16.mxu0 %v2111_v29 }
 0x1ea   : > { %2144 = vmatpush1.bf16.msra.mxu1 %v2143_v17 }
 0x1eb   : > { %2145 = vmatprep.subr.bf16.mxu1 %v2344_v3 }
 0x1ec   : > { %2114 = vmatpush3.bf16.msra.mxu0 %v2113_v32 }
 0x1ed   : > { %2157 = vmatprep.subr.bf16.mxu0 %v2344_v3 }
 0x1ee   : > { %2147 = vmatpush1.bf16.msra.mxu1 %v2146_v20  ;;  %v966_v20 = vld [vmem:[%s3390_s5] sm:$0xff] }
 0x1ef   : > { %2148 = vmatprep.subr.bf16.mxu1 %v2344_v3  ;;  %v2158_v22 = vpack.c.bf16 %v967_v21, %v966_v20  ;;  %v1214_v21 = vld [vmem:[%s3394_s9 + $0x10] sm:$0xff] }
 0x1f2   : > { %2150 = vmatpush1.bf16.msra.mxu1 %v2149_v23  ;;  %v2350_v23 = vmov 0.0  }
 0x1f3   : > { %2151 = vmatprep.subr.bf16.mxu1 %v2344_v3 }
 0x1f6   : > { %2153 = vmatpush1.bf16.msra.mxu1 %v2152_v26 }
 0x1f7   : > { %2154 = vmatprep.subr.bf16.mxu1 %v2344_v3 }
 0x1fa   : > { %2156 = vmatpush1.bf16.msra.mxu1 %v2155_v35 }
 0x1fb   : > { %2234 = vmatprep.subr.bf16.mxu1 %v2344_v3 }
 0x254   : > { %v676_v36 = vpop.permute.xlu0 %675 }
 0x255   : > { %v678_v37 = vsel %vm414_vm0, 0.0, %v676_v36  ;;  %v679_v38 = vsel %vm414_vm0, %v676_v36, 0.0 }
 0x256   : > { %v682_v39 = vrot.slane %v678_v37, 7  ;;  %v683_v40 = vrot.slane %v679_v38, 7 }
 0x258   : > { %v686_v41 = vsel %vm423_vm1, 0.0, %v682_v39  ;;  %v687_v42 = vsel %vm423_vm1, 0.0, %v683_v40  ;;  %v688_v43 = vsel %vm423_vm1, %v682_v39, 0.0  ;;  %v689_v44 = vsel %vm423_vm1, %v683_v40, 0.0  ;;  %v968_v40 = vld [vmem:[%s3391_s6] sm:$0x1] }
 0x259   : > { %v694_v45 = vrot.slane %v686_v41, 1  ;;  %v695_v46 = vrot.slane %v688_v43, 1  ;;  %v697_v47 = vrot.slane %v687_v42, 1  ;;  %v698_v48 = vrot.slane %v689_v44, 1 }
 0x25a   : > { %v707_v49 = vrot.slane %v686_v41, 2  ;;  %v708_v50 = vrot.slane %v688_v43, 2  ;;  %v711_v55 = vrot.slane %v689_v44, 2  ;;  %v710_v57 = vrot.slane %v687_v42, 2 }
 0x25b   : > { %v696_v51 = vsel %vm432_vm2, %v694_v45, %v695_v46  ;;  %v699_v52 = vsel %vm432_vm2, %v697_v47, %v698_v48  ;;  %v1044_v45 = vld [vmem:[%s3393_s8] sm:$0x1] }
 0x25c   : > { %v709_v53 = vsel %vm447_vm3, %v707_v49, %v708_v50  ;;  %v2314_v54 = vpack.i.bf16 %v699_v52, %v696_v51  ;;  %v712_v58 = vsel %vm447_vm3, %v710_v57, %v711_v55 }
 0x25d   : > { %713 = vrot.lane.b32.xlu0 %v709_v53, %s2345_s18 }
 0x25e   : > { %2315 = vrot.lane.b32.xlu1 %v2314_v54, %s2346_s19 }
 0x262   : > { %715 = vrot.lane.b32.xlu1 %v712_v58, %s2345_s18  ;;  %v1160_v58 = vlaneseq }
 0x2cf   : > { %v714_v0 = vpop.permute.xlu0 %713 }
 0x2d0   : > { %v2316_v59 = vpop.permute.xlu1 %2315 }
 0x2d1   : > { %v2318_v60 = vunpack.i.h.bf16 %v2316_v59  ;;  %v2317_v61 = vunpack.i.l.bf16 %v2316_v59 }
 0x2d3   : > { %v719_v62 = vsel %vm443_vm4, %v687_v42, %v2317_v61  ;;  %v704_v63 = vsel %vm443_vm4, %v2317_v61, %v2318_v60 }
 0x2d4   : > { %v716_v1 = vpop.permute.xlu1 %715  ;;  %854 = vmatprep.mubr.f32.mxu0 %v719_v62  ;;  %v720_v4 = vsel %vm458_vm5, %v704_v63, %v714_v0  ;;  %v1161_v63 = vshrl.u32 %v1160_v58, 7 }
 0x2d5   : > { %v717_v2 = vsel %vm458_vm5, %v714_v0, %v716_v1  ;;  %1874 = vmatmul.mubr.msk.f32.vlgmr.msra.gmra.mrb[2].mxu0 %vm2665_vm7, %v682_v39  ;;  %v1043_v39 = vld [vmem:[%s3392_s7] sm:$0xf] }
 0x2d6   : > { %1875 = vmatprep.mubr.msk.f32.mxu1 %vm3400_vm6, %v717_v2  ;;  %2159 = vmatpush3.bf16.msra.mxu0 %v2158_v22  ;;  %v1215_v22 = vld [vmem:[%s3394_s9 + $0x18] sm:$0xff] }
 0x2d7   : > { %925 = vmatmul.mubr.f32.vlgmr.msra.gmra.mrb[2].mxu1 %v720_v4  ;;  %2001 = vmatprep.mubr.msk.f32.mxu0 %vm2349_vm8, %v2350_v23 }
 0x2d8   : > { %2004 = vmatprep.subr.mxu0 %v2350_v23 }
 0x3a8   : > { %v1954_v6 = vpop.f32.mrb[2].mxu0 }
 0x3a9   : > { %v1955_v7 = vpop.f32.mrb[3].mxu0 }
 0x3aa   : > { %v1956_v9 = vadd.f32 %v1955_v7, %v1954_v6  ;;  %v926_v10 = vpop.f32.mrb[2].mxu1  ;;  %v1162_v6 = vsub.s32 0, %v1161_v63 }
 0x3ab   : > { %v928_v11 = vpop.f32.mrb[3].mxu1 }
 0x3ac   : > { %v857_v12 = vadd.f32 %v1956_v9, %v1872_v8 }
 0x3ae   : > { %v2901_v13 = vadd.f32 %v926_v10, %v857_v12  ;;  %v1228_v12 = vld [vmem:[%s3394_s9 + $0x80] sm:$0xff] }
 0x3b0   : > { %v930_v14 = vrot.slane %v2901_v13, 4 }
 0x3b2   : > { %v931_v15 = vadd.f32 %v930_v14, %v2901_v13  ;;  %v1229_v14 = vld [vmem:[%s3394_s9 + $0x88] sm:$0xff] }
 0x3b4   : > { %v932_v16 = vrot.slane %v931_v15, 2 }
 0x3b6   : > { %v933_v17 = vadd.f32 %v932_v16, %v931_v15  ;;  %v1212_v15 = vld [vmem:[%s3394_s9] sm:$0xff]  ;;  %v2160_v16 = vpack.c.bf16 %v1229_v14, %v1228_v12 }
 0x3b8   : > { %v934_v18 = vrot.slane %v933_v17, 1 }
 0x3ba   : > { %v935_v19 = vadd.f32 %v934_v18, %v933_v17  ;;  %v1213_v17 = vld [vmem:[%s3394_s9 + $0x8] sm:$0xff]  ;;  %v1231_v18 = vld [vmem:[%s3394_s9 + $0x98] sm:$0xff] }
 0x3bc   : > { %941 = vrot.lane.b32.xlu1 %v935_v19, %s2347_s14  ;;  %937 = vrot.lane.b32.xlu0 %v935_v19, %s2348_s15 }
 0x3c0   : > { %949 = vrot.lane.b32.xlu1 %v935_v19, %s2345_s18  ;;  %945 = vrot.lane.b32.xlu0 %v935_v19, %s2351_s16 }
 0x3c4   : > { %957 = vrot.lane.b32.xlu1 %v935_v19, %s2346_s19  ;;  %953 = vrot.lane.b32.xlu0 %v935_v19, %s3399_s17 }
 0x3c8   : > { %961 = vrot.lane.b32.xlu0 %v935_v19, %s2343_s13 }
 0x42e   : > { %v942_v24 = vpop.permute.xlu1 %941  ;;  %v938_v25 = vpop.permute.xlu0 %937 }
 0x42f   : > { %v940_v26 = vadd.f32 %v938_v25, %v935_v19  ;;  %v2162_v19 = vpack.c.bf16 %v1213_v17, %v1212_v15  ;;  %v1233_v25 = vld [vmem:[%s3394_s9 + $0xa8] sm:$0xff] }
 0x431   : > { %v944_v27 = vadd.f32 %v942_v24, %v940_v26  ;;  %v1232_v24 = vld [vmem:[%s3394_s9 + $0xa0] sm:$0xff]  ;;  %v2166_v26 = vpack.c.bf16 %v1215_v22, %v1214_v21  ;;  %v1245_v22 = vld [vmem:[%s3394_s9 + $0x108] sm:$0xff] }
 0x432   : > { %v950_v28 = vpop.permute.xlu1 %949  ;;  %v946_v29 = vpop.permute.xlu0 %945  ;;  %v1244_v21 = vld [vmem:[%s3394_s9 + $0x100] sm:$0xff] }
 0x433   : > { %v948_v30 = vadd.f32 %v946_v29, %v944_v27  ;;  %v2168_v27 = vpack.c.bf16 %v1233_v25, %v1232_v24  ;;  %v1217_v29 = vld [vmem:[%s3394_s9 + $0x28] sm:$0xff] }
 0x435   : > { %v952_v31 = vadd.f32 %v950_v28, %v948_v30  ;;  %v1216_v28 = vld [vmem:[%s3394_s9 + $0x20] sm:$0xff]  ;;  %v1234_v30 = vld [vmem:[%s3394_s9 + $0xb0] sm:$0xff] }
 0x436   : > { %v954_v32 = vpop.permute.xlu0 %953  ;;  %v958_v34 = vpop.permute.xlu1 %957 }
 0x437   : > { %v956_v33 = vadd.f32 %v954_v32, %v952_v31  ;;  %v1235_v31 = vld [vmem:[%s3394_s9 + $0xb8] sm:$0xff]  ;;  %v2170_v32 = vpack.c.bf16 %v1217_v29, %v1216_v28  ;;  %v1246_v28 = vld [vmem:[%s3394_s9 + $0x110] sm:$0xff] }
 0x438   : > { %v1247_v29 = vld [vmem:[%s3394_s9 + $0x118] sm:$0xff] }
 0x439   : > { %v960_v35 = vadd.f32 %v958_v34, %v956_v33  ;;  %v2172_v33 = vpack.c.bf16 %v1235_v31, %v1234_v30  ;;  %v1218_v34 = vld [vmem:[%s3394_s9 + $0x30] sm:$0xff] }
 0x43a   : > { %v962_v36 = vpop.permute.xlu0 %961 }
 0x43b   : > { %v964_v37 = vadd.f32 %v962_v36, %v960_v35  ;;  %v1219_v35 = vld [vmem:[%s3394_s9 + $0x38] sm:$0xff]  ;;  %v1236_v36 = vld [vmem:[%s3394_s9 + $0xc0] sm:$0xff] }
 0x43d   : > { %v965_v38 = vmul.f32 0.015625, %v964_v37  ;;  %v1237_v37 = vld [vmem:[%s3394_s9 + $0xc8] sm:$0xff] }
 0x43f   : > { %2002 = vmatmul.mubr.msk.f32.vlgmr.msra.gmra.mrb[4].mxu0 %vm414_vm0, %v965_v38  ;;  %v2174_v38 = vpack.c.bf16 %v1219_v35, %v1218_v34  ;;  %v1248_v34 = vld [vmem:[%s3394_s9 + $0x120] sm:$0xff]  ;;  %v1249_v35 = vld [vmem:[%s3394_s9 + $0x128] sm:$0xff] }
 0x440   : > { %2006 = vmatprep.mubr.msk.f32.mxu0 %vm2349_vm8, %v2350_v23  ;;  %2005 = vmatpush3.msk.msra.mxu0 %vm1049_vm9, %v1043_v39  ;;  %v2176_v39 = vpack.c.bf16 %v1237_v37, %v1236_v36  ;;  %v2199_v56 = vpack.c.bf16 %v1249_v35, %v1248_v34  ;;  %v1250_v36 = vld [vmem:[%s3394_s9 + $0x130] sm:$0xff]  ;;  %v1251_v37 = vld [vmem:[%s3394_s9 + $0x138] sm:$0xff]  ;;  %vm1493_vm8 = vcmask 917248  }
 0x441   : > { %2161 = vmatprep.subr.bf16.mxu0 %v2160_v16 }
 0x512   : > { %v1038_v41 = vpop.f32.mrb[4].mxu0 }
 0x513   : > { %v1039_v42 = vadd.f32 %v1038_v41, %v968_v40  ;;  %v2003_v43 = vpop.f32.mrb[5].mxu0  ;;  %v1220_v40 = vld [vmem:[%s3394_s9 + $0x40] sm:$0xff]  ;;  %v1221_v41 = vld [vmem:[%s3394_s9 + $0x48] sm:$0xff] }
 0x514   : > { %v1239_v43 = vld [vmem:[%s3394_s9 + $0xd8] sm:$0xff] }
 0x515   : > { %v1042_v44 = vmax.f32 %v1039_v42, 0.0  ;;  %v1238_v42 = vld [vmem:[%s3394_s9 + $0xd0] sm:$0xff] }
 0x517   : > { %2007 = vmatmul.mubr.msk.f32.vlgmr.msra.gmra.mrb[6].mxu0 %vm1045_vm10, %v1042_v44  ;;  %v2178_v44 = vpack.c.bf16 %v1221_v41, %v1220_v40  ;;  %v1253_v40 = vld [vmem:[%s3394_s9 + $0x148] sm:$0xff] }
 0x518   : > { %2163 = vmatpush3.bf16.msra.mxu0 %v2162_v19 }
 0x5ea   : > { %v1119_v46 = vpop.f32.mrb[6].mxu0 }
 0x5eb   : > { %v1120_v47 = vadd.f32 %v1119_v46, %v1044_v45  ;;  %v2008_v48 = vpop.f32.mrb[7].mxu0  ;;  %v2180_v45 = vpack.c.bf16 %v1239_v43, %v1238_v42  ;;  %v1222_v46 = vld [vmem:[%s3394_s9 + $0x50] sm:$0xff]  ;;  %v1255_v43 = vld [vmem:[%s3394_s9 + $0x158] sm:$0xff] }
 0x5ec   : > { %v1240_v48 = vld [vmem:[%s3394_s9 + $0xe0] sm:$0xff]  ;;  %v1254_v42 = vld [vmem:[%s3394_s9 + $0x150] sm:$0xff] }
 0x5ed   : > { %v1123_v49 = vsub.f32 0.0, %v1120_v47  ;;  %v1223_v47 = vld [vmem:[%s3394_s9 + $0x58] sm:$0xff] }
 0x5ef   : > { %v1124_v50 = vmul.f32 1.442695, %v1123_v49  ;;  %v1241_v49 = vld [vmem:[%s3394_s9 + $0xe8] sm:$0xff] }
 0x5f1   : > { %2327 = vpow2.f32 %v1124_v50  ;;  %v2182_v50 = vpack.c.bf16 %v1223_v47, %v1222_v46  ;;  %v1257_v46 = vld [vmem:[%s3394_s9 + $0x168] sm:$0xff] }
 0x5fb   : > { %v2328_v51 = vpop.eup %2327 }
 0x5fc   : > { %v1126_v52 = vadd.f32 1.0, %v2328_v51  ;;  %v2184_v51 = vpack.c.bf16 %v1241_v49, %v1240_v48  ;;  %v1258_v48 = vld [vmem:[%s3394_s9 + $0x170] sm:$0xff]  ;;  %v1259_v49 = vld [vmem:[%s3394_s9 + $0x178] sm:$0xff] }
 0x5fe   : > { %2329 = vrcp.f32 %v1126_v52  ;;  %v1224_v52 = vld [vmem:[%s3394_s9 + $0x60] sm:$0xff] }
 0x608   : > { %v2330_v53 = vpop.eup %2329 }
 0x609   : > { %1132 = vrot.lane.b32.xlu0 %v2330_v53, %s2346_s19  ;;  %1129 = vrot.lane.b32.xlu1 %v2330_v53, %s2343_s13 }
 0x60d   : > { %1138 = vrot.lane.b32.xlu0 %v2330_v53, %s2345_s18  ;;  %1135 = vrot.lane.b32.xlu1 %v2330_v53, %s3399_s17  ;;  %s2361_s17 = smov 42  }
 0x611   : > { %1144 = vrot.lane.b32.xlu0 %v2330_v53, %s2347_s14  ;;  %1141 = vrot.lane.b32.xlu1 %v2330_v53, %s2351_s16 }
 0x615   : > { %1147 = vrot.lane.b32.xlu1 %v2330_v53, %s2348_s15 }
 0x67b   : > { %v1133_v54 = vpop.permute.xlu0 %1132  ;;  %v1130_v55 = vpop.permute.xlu1 %1129 }
 0x67c   : > { %v1150_v57 = vsel %vm414_vm0, %v2330_v53, %v1130_v55  ;;  %v1225_v53 = vld [vmem:[%s3394_s9 + $0x68] sm:$0xff]  ;;  %v1243_v55 = vld [vmem:[%s3394_s9 + $0xf8] sm:$0xff] }
 0x67d   : > { %v1151_v60 = vsel %vm443_vm4, %v1150_v57, %v1133_v54  ;;  %v1242_v54 = vld [vmem:[%s3394_s9 + $0xf0] sm:$0xff]  ;;  %v2186_v57 = vpack.c.bf16 %v1225_v53, %v1224_v52  ;;  %v1261_v52 = vld [vmem:[%s3394_s9 + $0x188] sm:$0xff] }
 0x67e   : > { %v2188_v58 = vpack.c.bf16 %v1243_v55, %v1242_v54  ;;  %v1262_v54 = vld [vmem:[%s3394_s9 + $0x190] sm:$0xff]  ;;  %v1263_v55 = vld [vmem:[%s3394_s9 + $0x198] sm:$0xff] }
 0x67f   : > { %v1139_v59 = vpop.permute.xlu0 %1138  ;;  %v1136_v61 = vpop.permute.xlu1 %1135 }
 0x680   : > { %v1153_v62 = vsel %vm1152_vm11, %v1151_v60, %v1136_v61  ;;  %v1227_v60 = vld [vmem:[%s3394_s9 + $0x78] sm:$0xff] }
 0x681   : > { %v1154_v0 = vsel %vm458_vm5, %v1153_v62, %v1139_v59  ;;  %v1226_v59 = vld [vmem:[%s3394_s9 + $0x70] sm:$0xff] }
 0x682   : > { %v2190_v61 = vpack.c.bf16 %v1227_v60, %v1226_v59  ;;  %v1265_v59 = vld [vmem:[%s3394_s9 + $0x1a8] sm:$0xff] }
 0x683   : > { %v1142_v1 = vpop.permute.xlu1 %1141  ;;  %v1145_v2 = vpop.permute.xlu0 %1144 }
 0x684   : > { %v1156_v4 = vsel %vm3401_vm12, %v1154_v0, %v1142_v1  ;;  %vm1645_vm12 = vcmask 801792  }
 0x685   : > { %v1157_v7 = vsel %vm3400_vm6, %v1156_v4, %v1145_v2 }
 0x687   : > { %v1148_v8 = vpop.permute.xlu1 %1147 }
 0x688   : > { %v1159_v9 = vsel %vm1158_vm13, %v1157_v7, %v1148_v8 }
 0x689   : > { %v1163_v10 = vrot.slane %v1159_v9, %v1162_v6 }
 0x68b   : > { %v1164_v11 = vmul.f32 %v1163_v10, %v2901_v13  ;;  %v1230_v13 = vld [vmem:[%s3394_s9 + $0x90] sm:$0xff] }
 0x68c   : > { %v2164_v20 = vpack.c.bf16 %v1231_v18, %v1230_v13 }
 0x68d   : > { %1166 = vrot.lane.b32.xlu0 %v1164_v11, %s2343_s13 }
 0x68e   : > { %2165 = vmatprep.subr.bf16.mxu0 %v2164_v20 }
 0x68f   : > { %2167 = vmatpush3.bf16.msra.mxu0 %v2166_v26  ;;  %v2193_v26 = vpack.c.bf16 %v1245_v22, %v1244_v21 }
 0x690   : > { %2169 = vmatprep.subr.bf16.mxu0 %v2168_v27 }
 0x693   : > { %2171 = vmatpush3.bf16.msra.mxu0 %v2170_v32  ;;  %v2196_v32 = vpack.c.bf16 %v1247_v29, %v1246_v28 }
 0x694   : > { %2173 = vmatprep.subr.bf16.mxu0 %v2172_v33 }
 0x697   : > { %2175 = vmatpush3.bf16.msra.mxu0 %v2174_v38  ;;  %v2202_v38 = vpack.c.bf16 %v1251_v37, %v1250_v36 }
 0x698   : > { %2177 = vmatprep.subr.bf16.mxu0 %v2176_v39  ;;  %v1252_v39 = vld [vmem:[%s3394_s9 + $0x140] sm:$0xff] }
 0x699   : > { %v2205_v41 = vpack.c.bf16 %v1253_v40, %v1252_v39 }
 0x69b   : > { %2179 = vmatpush3.bf16.msra.mxu0 %v2178_v44  ;;  %v2208_v44 = vpack.c.bf16 %v1255_v43, %v1254_v42 }
 0x69c   : > { %2181 = vmatprep.subr.bf16.mxu0 %v2180_v45  ;;  %v1256_v45 = vld [vmem:[%s3394_s9 + $0x160] sm:$0xff] }
 0x69d   : > { %v2211_v47 = vpack.c.bf16 %v1257_v46, %v1256_v45 }
 0x69f   : > { %2183 = vmatpush3.bf16.msra.mxu0 %v2182_v50  ;;  %v2214_v50 = vpack.c.bf16 %v1259_v49, %v1258_v48 }
 0x6a0   : > { %2185 = vmatprep.subr.bf16.mxu0 %v2184_v51  ;;  %v1260_v51 = vld [vmem:[%s3394_s9 + $0x180] sm:$0xff] }
 0x6a1   : > { %v2217_v53 = vpack.c.bf16 %v1261_v52, %v1260_v51 }
 0x6a3   : > { %2187 = vmatpush3.bf16.msra.mxu0 %v2186_v57  ;;  %v2220_v57 = vpack.c.bf16 %v1263_v55, %v1262_v54 }
 0x6a4   : > { %2189 = vmatprep.subr.bf16.mxu0 %v2188_v58  ;;  %v1264_v58 = vld [vmem:[%s3394_s9 + $0x1a0] sm:$0xff] }
 0x6a5   : > { %v2223_v60 = vpack.c.bf16 %v1265_v59, %v1264_v58 }
 0x6a7   : > { %2191 = vmatpush3.bf16.msra.mxu0 %v2190_v61  ;;  %v1266_v61 = vld [vmem:[%s3394_s9 + $0x1b0] sm:$0xff] }
 0x6a8   : > { %2192 = vmatprep.subr.bf16.mxu0 %v2344_v3 }
 0x6ff   : > { %v1167_v62 = vpop.permute.xlu0 %1166 }
 0x700   : > { %v1169_v63 = vsel %vm414_vm0, 0.0, %v1167_v62  ;;  %v1170_v0 = vsel %vm414_vm0, %v1167_v62, 0.0  ;;  %v1267_v62 = vld [vmem:[%s3394_s9 + $0x1b8] sm:$0xff] }
 0x701   : > { %v1173_v1 = vrot.slane %v1169_v63, 7  ;;  %v1174_v2 = vrot.slane %v1170_v0, 7  ;;  %v2226_v63 = vpack.c.bf16 %v1267_v62, %v1266_v61  ;;  %v1268_v0 = vld [vmem:[%s3394_s9 + $0x1c0] sm:$0xff] }
 0x703   : > { %v1177_v4 = vsel %vm423_vm1, 0.0, %v1173_v1  ;;  %v1178_v6 = vsel %vm423_vm1, 0.0, %v1174_v2  ;;  %v1179_v7 = vsel %vm423_vm1, %v1173_v1, 0.0  ;;  %v1180_v8 = vsel %vm423_vm1, %v1174_v2, 0.0 }
 0x704   : > { %v1189_v9 = vrot.slane %v1180_v8, 1  ;;  %v1188_v10 = vrot.slane %v1178_v6, 1  ;;  %v1185_v11 = vrot.slane %v1177_v4, 1  ;;  %v1186_v12 = vrot.slane %v1179_v7, 1 }
 0x705   : > { %v1202_v14 = vrot.slane %v1180_v8, 2  ;;  %v1201_v16 = vrot.slane %v1178_v6, 2  ;;  %v1198_v13 = vrot.slane %v1177_v4, 2  ;;  %v1199_v18 = vrot.slane %v1179_v7, 2  ;;  %v1270_v4 = vld [vmem:[%s3394_s9 + $0x1d0] sm:$0xff] }
 0x706   : > { %v1190_v15 = vsel %vm432_vm2, %v1188_v10, %v1189_v9  ;;  %v1187_v17 = vsel %vm432_vm2, %v1185_v11, %v1186_v12  ;;  %vm1449_vm1 = vcmask 392448  }
 0x707   : > { %1193 = vrot.lane.b32.xlu0 %v1190_v15, %s2346_s19  ;;  %1191 = vrot.lane.b32.xlu1 %v1187_v17, %s2346_s19  ;;  %v1203_v19 = vsel %vm447_vm3, %v1201_v16, %v1202_v14  ;;  %v1200_v20 = vsel %vm447_vm3, %v1198_v13, %v1199_v18  ;;  %v1879_v14 = vld [vmem:[%s3395_s10] ss:$0 sm:$0xff] }
 0x70b   : > { %1206 = vrot.lane.b32.xlu0 %v1203_v19, %s2345_s18  ;;  %1204 = vrot.lane.b32.xlu1 %v1200_v20, %s2345_s18 }
 0x779   : > { %v3068_v24 = vpop.permute.xlu0 %1193  ;;  %v3070_v25 = vpop.permute.xlu1 %1191 }
 0x77a   : > { %v1210_v27 = vsel %vm443_vm4, %v1178_v6, %v3070_v25  ;;  %v1271_v6 = vld [vmem:[%s3394_s9 + $0x1d8] sm:$0xff]  ;;  %v1195_v8 = vsel %vm443_vm4, %v3070_v25, %v3068_v24 }
 0x77b   : > { %1345 = vmatprep.mubr.f32.mxu0 %v1210_v27  ;;  %v2232_v7 = vpack.c.bf16 %v1271_v6, %v1270_v4 }
 0x77c   : > { %1881 = vmatmul.mubr.msk.f32.vlgmr.msra.gmra.mrb[8].mxu0 %vm2665_vm7, %v1173_v1  ;;  %v1269_v1 = vld [vmem:[%s3394_s9 + $0x1c8] sm:$0xff]  ;;  %vm1471_vm7 = vcmask 654848  }
 0x77d   : > { %v1207_v30 = vpop.permute.xlu0 %1206  ;;  %2194 = vmatpush1.bf16.msra.mxu0 %v2193_v26  ;;  %v3082_v31 = vpop.permute.xlu1 %1204  ;;  %v2229_v2 = vpack.c.bf16 %v1269_v1, %v1268_v0 }
 0x77e   : > { %v1208_v33 = vsel %vm458_vm5, %v3082_v31, %v1207_v30  ;;  %2195 = vmatprep.subr.bf16.mxu0 %v2344_v3  ;;  %v1211_v9 = vsel %vm458_vm5, %v1195_v8, %v3082_v31 }
 0x77f   : > { %1882 = vmatprep.mubr.msk.f32.mxu0 %vm3400_vm6, %v1208_v33  ;;  %vm1519_vm6 = vcmask 56320  }
 0x781   : > { %2197 = vmatpush1.bf16.msra.mxu0 %v2196_v32 }
 0x782   : > { %2198 = vmatprep.subr.bf16.mxu0 %v2344_v3 }
 0x785   : > { %2200 = vmatpush1.bf16.msra.mxu0 %v2199_v56 }
 0x786   : > { %2201 = vmatprep.subr.bf16.mxu0 %v2344_v3 }
 0x789   : > { %2203 = vmatpush1.bf16.msra.mxu0 %v2202_v38 }
 0x78a   : > { %2204 = vmatprep.subr.bf16.mxu0 %v2344_v3 }
 0x78d   : > { %2206 = vmatpush1.bf16.msra.mxu0 %v2205_v41 }
 0x78e   : > { %2207 = vmatprep.subr.bf16.mxu0 %v2344_v3 }
 0x791   : > { %2209 = vmatpush1.bf16.msra.mxu0 %v2208_v44 }
 0x792   : > { %2210 = vmatprep.subr.bf16.mxu0 %v2344_v3 }
 0x795   : > { %2212 = vmatpush1.bf16.msra.mxu0 %v2211_v47 }
 0x796   : > { %2213 = vmatprep.subr.bf16.mxu0 %v2344_v3 }
 0x799   : > { %2215 = vmatpush1.bf16.msra.mxu0 %v2214_v50 }
 0x79a   : > { %2216 = vmatprep.subr.bf16.mxu0 %v2344_v3 }
 0x79d   : > { %2218 = vmatpush1.bf16.msra.mxu0 %v2217_v53 }
 0x79e   : > { %2219 = vmatprep.subr.bf16.mxu0 %v2344_v3 }
 0x7a1   : > { %2221 = vmatpush1.bf16.msra.mxu0 %v2220_v57 }
 0x7a2   : > { %2222 = vmatprep.subr.bf16.mxu0 %v2344_v3 }
 0x7a5   : > { %2224 = vmatpush1.bf16.msra.mxu0 %v2223_v60 }
 0x7a6   : > { %2225 = vmatprep.subr.bf16.mxu0 %v2344_v3 }
 0x7a9   : > { %2227 = vmatpush1.bf16.msra.mxu0 %v2226_v63 }
 0x7aa   : > { %2228 = vmatprep.subr.bf16.mxu0 %v2344_v3 }
 0x7ad   : > { %2230 = vmatpush1.bf16.msra.mxu0 %v2229_v2 }
 0x7ae   : > { %2231 = vmatprep.subr.bf16.mxu0 %v2344_v3 }
 0x7b1   : > { %2233 = vmatpush1.bf16.msra.mxu0 %v2232_v7 }
 0x7b4   : > { %1416 = vmatmul.mubr.f32.vlgmr.msra.gmra.mrb[10].mxu0 %v1211_v9 }
 0x84f   : > { %v1994_v10 = vpop.f32.mrb[8].mxu0 }
 0x850   : > { %v1995_v11 = vpop.f32.mrb[9].mxu0 }
 0x851   : > { %v1996_v12 = vadd.f32 %v1995_v11, %v1994_v10 }
 0x853   : > { %v1348_v15 = vadd.f32 %v1996_v12, %v1879_v14 }
 0x887   : > { %v1417_v16 = vpop.f32.mrb[10].mxu0 }
 0x888   : > { %v3180_v17 = vadd.f32 %v1417_v16, %v1348_v15  ;;  %v1419_v13 = vpop.f32.mrb[11].mxu0 }
 0x88a   : > { %v3184_v18 = vadd.f32 %v3180_v17, %v2679_v5 }
 0x88c   : > { %1442 = vrot.lane.b32.xlu0 %v3184_v18, %s2347_s14  ;;  %1431 = vrot.lane.b32.xlu1 %v3184_v18, %s2348_s15  ;;  %v1422_v5 = vsel %vm414_vm0, %v3184_v18, 0.0  ;;  %v1427_v19 = vsel %vm414_vm0, %v3184_v18, -inf  ;;  %v1461_v20 = vsel %vm1460_vm14, %v3184_v18, -inf  ;;  %v1439_v21 = vsel %vm1438_vm15, %v3184_v18, -inf  ;;  %s2357_s14 = smov 26  }
 0x88d   : > { %v1450_v22 = vsel %vm1449_vm1, %v3184_v18, -inf  ;;  %v1472_v36 = vsel %vm1471_vm7, %v3184_v18, -inf  ;;  %vm1482_vm14 = vcmask 786048   ;;  %v1494_v38 = vsel %vm1493_vm8, %v3184_v18, -inf }
 0x88e   : > { %v1483_v39 = vsel %vm1482_vm14, %v3184_v18, -inf  ;;  %vm1504_vm15 = vcmask 1048448   ;;  %vm1508_vm1 = vcmask 7168   ;;  %vm1510_vm7 = vcmask 15360  }
 0x88f   : > { %v1505_v40 = vsel %vm1504_vm15, %v3184_v18, -inf  ;;  %vm1512_vm8 = vcmask 23552   ;;  %vm1515_vm14 = vcmask 39936   ;;  %vm1517_vm15 = vcmask 48128  }
 0x890   : > { %1464 = vrot.lane.b32.xlu0 %v3184_v18, %s2345_s18  ;;  %1453 = vrot.lane.b32.xlu1 %v3184_v18, %s2351_s16  ;;  %s2364_s18 = smov 84  }
 0x894   : > { %1486 = vrot.lane.b32.xlu0 %v3184_v18, %s2346_s19  ;;  %1475 = vrot.lane.b32.xlu1 %v3184_v18, %s3404_s20  ;;  %s2356_s19 = smov 126   ;;  %s2362_s20 = smov 56  }
 0x898   : > { %1497 = vrot.lane.b32.xlu1 %v3184_v18, %s2343_s13  ;;  %s2353_s13 = smov 3  }
 0x8b3   : > { %1423 = vadd.xlane.f32.xlu0 %v1422_v5 }
 0x8b7   : > { %1428 = vmax.xlane.f32.xlu0 %v1427_v19  ;;  %v1658_v19 = vld [vmem:[%s3396_s11] sm:$0xff] }
 0x8bb   : > { %1462 = vmax.xlane.f32.xlu0 %v1461_v20  ;;  %v1659_v20 = vld [vmem:[%s3396_s11 + $0x8] sm:$0xff] }
 0x8bc   : > { %1440 = vmax.xlane.f32.xlu1 %v1439_v21  ;;  %v1660_v21 = vld [vmem:[%s3396_s11 + $0x10] sm:$0xff] }
 0x8c0   : > { %1451 = vmax.xlane.f32.xlu1 %v1450_v22  ;;  %v2235_v22 = vpack.c.bf16 %v1659_v20, %v1658_v19  ;;  %v1680_v20 = vld [vmem:[%s3396_s11 + $0xb0] sm:$0xff] }
 0x8c2   : > { %2236 = vmatpush1.bf16.msra.mxu1 %v2235_v22 }
 0x8c3   : > { %2237 = vmatprep.subr.bf16.mxu1 %v2344_v3 }
 0x8fe   : > { %v1443_v24 = vpop.permute.xlu0 %1442  ;;  %v1432_v25 = vpop.permute.xlu1 %1431 }
 0x8ff   : > { %v1434_v26 = vsel %vm414_vm0, %v1432_v25, 0.0  ;;  %v1445_v27 = vsel %vm414_vm0, %v1443_v24, 0.0  ;;  %v1661_v24 = vld [vmem:[%s3396_s11 + $0x18] sm:$0xff] }
 0x900   : > { %1435 = vadd.xlane.f32.xlu1 %v1434_v26  ;;  %1446 = vadd.xlane.f32.xlu0 %v1445_v27  ;;  %v2238_v25 = vpack.c.bf16 %v1661_v24, %v1660_v21  ;;  %v1662_v26 = vld [vmem:[%s3396_s11 + $0x20] sm:$0xff]  ;;  %v1663_v27 = vld [vmem:[%s3396_s11 + $0x28] sm:$0xff]  ;;  %v1681_v21 = vld [vmem:[%s3396_s11 + $0xb8] sm:$0xff] }
 0x902   : > { %v1465_v28 = vpop.permute.xlu0 %1464  ;;  %v1454_v29 = vpop.permute.xlu1 %1453  ;;  %2239 = vmatpush1.bf16.msra.mxu1 %v2238_v25 }
 0x903   : > { %v1467_v30 = vsel %vm414_vm0, %v1465_v28, 0.0  ;;  %v1456_v31 = vsel %vm414_vm0, %v1454_v29, 0.0  ;;  %v2241_v28 = vpack.c.bf16 %v1663_v27, %v1662_v26  ;;  %2240 = vmatprep.subr.bf16.mxu1 %v2344_v3  ;;  %v1664_v29 = vld [vmem:[%s3396_s11 + $0x30] sm:$0xff]  ;;  %v2268_v26 = vpack.c.bf16 %v1681_v21, %v1680_v20 }
 0x904   : > { %1468 = vadd.xlane.f32.xlu1 %v1467_v30  ;;  %1457 = vadd.xlane.f32.xlu0 %v1456_v31  ;;  %v1665_v30 = vld [vmem:[%s3396_s11 + $0x38] sm:$0xff]  ;;  %v2371_v20 = vmov 3   ;;  %v2372_v21 = vmov 5  }
 0x905   : > { %v2244_v31 = vpack.c.bf16 %v1665_v30, %v1664_v29 }
 0x906   : > { %v1487_v32 = vpop.permute.xlu0 %1486  ;;  %v1476_v33 = vpop.permute.xlu1 %1475  ;;  %2242 = vmatpush1.bf16.msra.mxu1 %v2241_v28 }
 0x907   : > { %v1489_v34 = vsel %vm414_vm0, %v1487_v32, 0.0  ;;  %v1478_v35 = vsel %vm414_vm0, %v1476_v33, 0.0  ;;  %2243 = vmatprep.subr.bf16.mxu1 %v2344_v3  ;;  %v1666_v32 = vld [vmem:[%s3396_s11 + $0x40] sm:$0xff]  ;;  %v1667_v33 = vld [vmem:[%s3396_s11 + $0x48] sm:$0xff] }
 0x908   : > { %1490 = vadd.xlane.f32.xlu1 %v1489_v34  ;;  %1479 = vadd.xlane.f32.xlu0 %v1478_v35  ;;  %v2247_v34 = vpack.c.bf16 %v1667_v33, %v1666_v32  ;;  %v1668_v35 = vld [vmem:[%s3396_s11 + $0x50] sm:$0xff] }
 0x90a   : > { %v1498_v56 = vpop.permute.xlu1 %1497  ;;  %2245 = vmatpush1.bf16.msra.mxu1 %v2244_v31 }
 0x90b   : > { %v1500_v37 = vsel %vm414_vm0, %v1498_v56, 0.0  ;;  %2246 = vmatprep.subr.bf16.mxu1 %v2344_v3  ;;  %v1669_v56 = vld [vmem:[%s3396_s11 + $0x58] sm:$0xff] }
 0x90c   : > { %1473 = vmax.xlane.f32.xlu1 %v1472_v36  ;;  %1501 = vadd.xlane.f32.xlu0 %v1500_v37  ;;  %v2250_v36 = vpack.c.bf16 %v1669_v56, %v1668_v35  ;;  %v1670_v37 = vld [vmem:[%s3396_s11 + $0x60] sm:$0xff] }
 0x90e   : > { %2248 = vmatpush1.bf16.msra.mxu1 %v2247_v34 }
 0x90f   : > { %2249 = vmatprep.subr.bf16.mxu1 %v2344_v3 }
 0x910   : > { %1495 = vmax.xlane.f32.xlu1 %v1494_v38  ;;  %1484 = vmax.xlane.f32.xlu0 %v1483_v39  ;;  %v1671_v38 = vld [vmem:[%s3396_s11 + $0x68] sm:$0xff] }
 0x911   : > { %v2253_v39 = vpack.c.bf16 %v1671_v38, %v1670_v37 }
 0x912   : > { %2251 = vmatpush1.bf16.msra.mxu1 %v2250_v36 }
 0x913   : > { %2252 = vmatprep.subr.bf16.mxu1 %v2344_v3 }
 0x914   : > { %1506 = vmax.xlane.f32.xlu0 %v1505_v40 }
 0x916   : > { %2254 = vmatpush1.bf16.msra.mxu1 %v2253_v39 }
 0x917   : > { %2255 = vmatprep.subr.bf16.mxu1 %v2344_v3 }
 0x940   : > { %v1424_v41 = vpop.xlane.xlu0 %1423 }
 0x941   : > { %v1426_v48 = vmul.f32 0.0625, %v1424_v41 }
 0x944   : > { %v1429_v42 = vpop.xlane.xlu0 %1428 }
 0x948   : > { %v1463_v44 = vpop.xlane.xlu0 %1462 }
 0x949   : > { %v1441_v43 = vpop.xlane.xlu1 %1440 }
 0x94a   : > { %v1521_v0 = vsel %vm1508_vm1, %v1429_v42, %v1441_v43  ;;  %v1672_v43 = vld [vmem:[%s3396_s11 + $0x70] sm:$0xff] }
 0x94d   : > { %v1452_v45 = vpop.xlane.xlu1 %1451 }
 0x94e   : > { %v1522_v2 = vsel %vm1510_vm7, %v1521_v0, %v1452_v45  ;;  %v1677_v0 = vld [vmem:[%s3396_s11 + $0x98] sm:$0xff] }
 0x94f   : > { %v1523_v9 = vsel %vm1512_vm8, %v1522_v2, %v1463_v44  ;;  %v1673_v44 = vld [vmem:[%s3396_s11 + $0x78] sm:$0xff] }
 0x950   : > { %v2256_v45 = vpack.c.bf16 %v1673_v44, %v1672_v43 }
 0x952   : > { %2257 = vmatpush1.bf16.msra.mxu1 %v2256_v45 }
 0x953   : > { %2258 = vmatprep.subr.bf16.mxu1 %v2344_v3 }
 0x98d   : > { %v1436_v46 = vpop.xlane.xlu1 %1435  ;;  %v1447_v47 = vpop.xlane.xlu0 %1446 }
 0x98e   : > { %v1437_v49 = vmul.f32 0.0625, %v1436_v46  ;;  %v1448_v50 = vmul.f32 0.0625, %v1447_v47 }
 0x990   : > { %v1509_v51 = vsel %vm1508_vm1, %v1426_v48, %v1437_v49  ;;  %vm1566_vm1 = vcmask 1044480  }
 0x991   : > { %v1469_v52 = vpop.xlane.xlu1 %1468  ;;  %v1458_v53 = vpop.xlane.xlu0 %1457  ;;  %v1511_v55 = vsel %vm1510_vm7, %v1509_v51, %v1448_v50  ;;  %v1674_v50 = vld [vmem:[%s3396_s11 + $0x80] sm:$0xff]  ;;  %v1675_v51 = vld [vmem:[%s3396_s11 + $0x88] sm:$0xff]  ;;  %vm1635_vm7 = vcmask 228352  }
 0x992   : > { %v1459_v54 = vmul.f32 0.0625, %v1458_v53  ;;  %v1470_v57 = vmul.f32 0.0625, %v1469_v52 }
 0x994   : > { %v1513_v58 = vsel %vm1512_vm8, %v1511_v55, %v1459_v54 }
 0x995   : > { %v1491_v59 = vpop.xlane.xlu1 %1490  ;;  %v1480_v60 = vpop.xlane.xlu0 %1479  ;;  %v1514_v63 = vsel %vm1045_vm10, %v1513_v58, %v1470_v57  ;;  %v2259_v58 = vpack.c.bf16 %v1675_v51, %v1674_v50 }
 0x996   : > { %v1481_v61 = vmul.f32 0.0625, %v1480_v60  ;;  %v1492_v62 = vmul.f32 0.0625, %v1491_v59 }
 0x997   : > { %2260 = vmatpush1.bf16.msra.mxu1 %v2259_v58 }
 0x998   : > { %v1516_v1 = vsel %vm1515_vm14, %v1514_v63, %v1481_v61  ;;  %v1676_v63 = vld [vmem:[%s3396_s11 + $0x90] sm:$0xff]  ;;  %2261 = vmatprep.subr.bf16.mxu1 %v2344_v3 }
 0x999   : > { %v1474_v4 = vpop.xlane.xlu1 %1473  ;;  %v1502_v6 = vpop.xlane.xlu0 %1501  ;;  %v1518_v8 = vsel %vm1517_vm15, %v1516_v1, %v1492_v62 }
 0x99a   : > { %v1503_v7 = vmul.f32 0.0625, %v1502_v6  ;;  %v1524_v11 = vsel %vm1045_vm10, %v1523_v9, %v1474_v4  ;;  %vm1538_vm10 = vcmask 1042432   ;;  %v1678_v9 = vld [vmem:[%s3396_s11 + $0xa0] sm:$0xff] }
 0x99c   : > { %v1520_v10 = vsel %vm1519_vm6, %v1518_v8, %v1503_v7 }
 0x99d   : > { %1529 = vrot.lane.b32.xlu1 %v1520_v10, %s2353_s13  ;;  %v1485_v12 = vpop.xlane.xlu0 %1484  ;;  %v1496_v14 = vpop.xlane.xlu1 %1495  ;;  %v1679_v10 = vld [vmem:[%s3396_s11 + $0xa8] sm:$0xff] }
 0x99e   : > { %v1525_v15 = vsel %vm1515_vm14, %v1524_v11, %v1485_v12  ;;  %v2262_v11 = vpack.c.bf16 %v1677_v0, %v1676_v63  ;;  %vm1639_vm14 = vcmask 457728  }
 0x99f   : > { %v1526_v13 = vsel %vm1517_vm15, %v1525_v15, %v1496_v14  ;;  %vm1650_vm15 = vcmask 97280  }
 0x9a0   : > { %2263 = vmatpush1.bf16.msra.mxu1 %v2262_v11 }
 0x9a1   : > { %v1507_v16 = vpop.xlane.xlu0 %1506  ;;  %2264 = vmatprep.subr.bf16.mxu1 %v2344_v3 }
 0x9a2   : > { %v1527_v5 = vsel %vm1519_vm6, %v1526_v13, %v1507_v16  ;;  %vm1533_vm6 = vcmask 89088   ;;  %v2265_v16 = vpack.c.bf16 %v1679_v10, %v1678_v9 }
 0x9a3   : > { %1542 = vrot.lane.b32.xlu0 %v1527_v5, %s2353_s13  ;;  %s2363_s13 = smov 70  }
 0x9a4   : > { %2266 = vmatpush1.bf16.msra.mxu1 %v2265_v16 }
 0x9a5   : > { %2267 = vmatprep.subr.bf16.mxu1 %v2344_v3  ;;  %v1682_v3 = vld [vmem:[%s3396_s11 + $0xc0] sm:$0xf] }
 0x9a8   : > { %2269 = vmatpush1.bf16.msra.mxu1 %v2268_v26 }
 0x9a9   : > { %1738 = vmatprep.subr.mxu1 %v2350_v23 }
 0x9ac   : > { %1883 = vmatpush1.msk.msra.mxu1 %vm1049_vm9, %v1682_v3 }
 0xa0f   : > { %v1530_v40 = vpop.permute.xlu1 %1529 }
 0xa10   : > { %v1532_v41 = vsel %vm1512_vm8, 0.0, %v1530_v40 }
 0xa11   : > { %v1534_v42 = vsel %vm1533_vm6, %v1532_v41, 0.0 }
 0xa12   : > { %v1536_v46 = vrot.slane %v1534_v42, 5 }
 0xa14   : > { %v3293_v53 = vsel %vm1538_vm10, 0.0, %v1536_v46  ;;  %v3296_v54 = vsel %vm1538_vm10, %v1536_v46, 0.0 }
 0xa15   : > { %v1543_v47 = vpop.permute.xlu0 %1542  ;;  %v1554_v7 = vrot.slane %v3293_v53, 1  ;;  %v1555_v8 = vrot.slane %v3296_v54, 1  ;;  %v1560_v5 = vrot.slane %v3293_v53, 2  ;;  %v1561_v19 = vrot.slane %v3296_v54, 2 }
 0xa16   : > { %v1545_v48 = vsel %vm1512_vm8, 0.0, %v1543_v47  ;;  %v1567_v24 = vrot.slane %v3293_v53, 3  ;;  %v1568_v25 = vrot.slane %v3296_v54, 3  ;;  %v1573_v28 = vrot.slane %v3293_v53, 4 }
 0xa17   : > { %v1546_v49 = vsel %vm1533_vm6, %v1545_v48, 0.0  ;;  %v1556_v13 = vsel %vm432_vm2, %v1554_v7, %v1555_v8  ;;  %v1562_v27 = vsel %vm447_vm3, %v1560_v5, %v1561_v19  ;;  %v1574_v29 = vrot.slane %v3296_v54, 4 }
 0xa18   : > { %v1548_v52 = vrot.slane %v1546_v49, 5  ;;  %v1569_v30 = vsel %vm1566_vm1, %v1567_v24, %v1568_v25  ;;  %v1579_v31 = vrot.slane %v3293_v53, 5  ;;  %v1580_v32 = vrot.slane %v3296_v54, 5 }
 0xa19   : > { %v1575_v33 = vsel %vm1049_vm9, %v1573_v28, %v1574_v29  ;;  %v1586_v34 = vrot.slane %v3293_v53, 6  ;;  %v1587_v35 = vrot.slane %v3296_v54, 6  ;;  %vm1637_vm8 = vcmask 343040  }
 0xa1a   : > { %v3299_v55 = vsel %vm1538_vm10, 0.0, %v1548_v52  ;;  %v3302_v57 = vsel %vm1538_vm10, %v1548_v52, 0.0  ;;  %v1581_v56 = vsel %vm1538_vm10, %v1579_v31, %v1580_v32  ;;  %vm1643_vm6 = vcmask 687104  }
 0xa1b   : > { %1593 = vrot.lane.b32.xlu1 %v3299_v55, %s2354_s26  ;;  %v1609_v59 = vrot.slane %v3299_v55, 3  ;;  %v1610_v60 = vrot.slane %v3302_v57, 3  ;;  %v1603_v61 = vrot.slane %v3299_v55, 2  ;;  %v1604_v62 = vrot.slane %v3302_v57, 2 }
 0xa1c   : > { %v1615_v4 = vrot.slane %v3299_v55, 4  ;;  %v1616_v6 = vrot.slane %v3302_v57, 4  ;;  %v1621_v14 = vrot.slane %v3299_v55, 5  ;;  %v1622_v15 = vrot.slane %v3302_v57, 5 }
 0xa1d   : > { %v1611_v1 = vsel %vm1566_vm1, %v1609_v59, %v1610_v60  ;;  %v1605_v2 = vsel %vm447_vm3, %v1603_v61, %v1604_v62  ;;  %vm1585_vm3 = vcmask 1041408   ;;  %v1627_v36 = vrot.slane %v3299_v55, 6 }
 0xa1e   : > { %1612 = vrot.lane.b32.xlu0 %v1611_v1, %s2355_s29  ;;  %v1617_v12 = vsel %vm1049_vm9, %v1615_v4, %v1616_v6  ;;  %v1623_v22 = vsel %vm1538_vm10, %v1621_v14, %v1622_v15  ;;  %v1628_v37 = vrot.slane %v3302_v57, 6  ;;  %v1588_v38 = vsel %vm1585_vm3, %v1586_v34, %v1587_v35 }
 0xa1f   : > { %1606 = vrot.lane.b32.xlu1 %v1605_v2, %s2356_s19  ;;  %v1597_v23 = vrot.slane %v3299_v55, 1  ;;  %v1598_v39 = vrot.slane %v3302_v57, 1  ;;  %s2365_s19 = smov 54   ;;  %vm1633_vm9 = vcmask 113664   ;;  %vm1652_vm10 = vcmask 211968  }
 0xa20   : > { %v1629_v40 = vsel %vm1585_vm3, %v1627_v36, %v1628_v37  ;;  %vm1654_vm1 = vcmask 326656   ;;  %vm1656_vm3 = vcmask 441344   ;;  %v2366_v7 = vmov 1  }
 0xa21   : > { %v1599_v41 = vsel %vm432_vm2, %v1597_v23, %v1598_v39  ;;  %vm1641_vm2 = vcmask 572416   ;;  %2320 = vset.pattern.permute.xlu0 %v2366_v7  ;;  %v2367_v8 = vmov 0   ;;  %v2369_v5 = vmov 2  }
 0xa22   : > { %1618 = vrot.lane.b32.xlu0 %v1617_v12, %s2357_s14  ;;  %2319 = vset.pattern.permute.xlu1 %v2367_v8  ;;  %v2370_v19 = vmov 7  }
 0xa23   : > { %1557 = vrot.lane.b32.xlu1 %v1556_v13, %s2358_s27  ;;  %v2368_v13 = vmov 4  }
 0xa26   : > { %1624 = vrot.lane.b32.xlu0 %v1623_v22, %s2359_s28  ;;  %v2373_v22 = vmov 6  }
 0xa27   : > { %1563 = vrot.lane.b32.xlu1 %v1562_v27, %s2360_s23 }
 0xa2a   : > { %1570 = vrot.lane.b32.xlu0 %v1569_v30, %s2361_s17 }
 0xa2b   : > { %1576 = vrot.lane.b32.xlu1 %v1575_v33, %s2362_s20 }
 0xa2e   : > { %1582 = vrot.lane.b32.xlu0 %v1581_v56, %s2363_s13 }
 0xa2f   : > { %1589 = vrot.lane.b32.xlu1 %v1588_v38, %s2364_s18 }
 0xa32   : > { %1630 = vrot.lane.b32.xlu0 %v1629_v40, %s2365_s19 }
 0xa33   : > { %1600 = vrot.lane.b32.xlu1 %v1599_v41, %s2348_s15  ;;  %s3407_s15 = sshll.u32 %s3409_s22, 3 }
 0xa34   : > { %s408_s24 = scalar_lea.vmem %s3397_s12, %s3407_s15 }
 0xa8d   : > { %v1594_v42 = vpop.permute.xlu1 %1593 }
 0xa90   : > { %v1613_v43 = vpop.permute.xlu0 %1612 }
 0xa91   : > { %v1607_v44 = vpop.permute.xlu1 %1606 }
 0xa92   : > { %v1651_v60 = vsel %vm1650_vm15, %v1607_v44, %v1613_v43 }
 0xa94   : > { %v1619_v45 = vpop.permute.xlu0 %1618 }
 0xa95   : > { %v1558_v46 = vpop.permute.xlu1 %1557  ;;  %v1653_v62 = vsel %vm1652_vm10, %v1651_v60, %v1619_v45 }
 0xa96   : > { %v1634_v49 = vsel %vm1633_vm9, %v3293_v53, %v1558_v46  ;;  %vm1683_vm9 = vcmask 556032  }
 0xa98   : > { %v1625_v47 = vpop.permute.xlu0 %1624 }
 0xa99   : > { %v1564_v48 = vpop.permute.xlu1 %1563  ;;  %v1655_v53 = vsel %vm1654_vm1, %v1653_v62, %v1625_v47 }
 0xa9a   : > { %v1636_v50 = vsel %vm1635_vm7, %v1634_v49, %v1564_v48  ;;  %vm1648_vm7 = vcmask 1031168  }
 0xa9c   : > { %v1571_v51 = vpop.permute.xlu0 %1570 }
 0xa9d   : > { %v1638_v52 = vsel %vm1637_vm8, %v1636_v50, %v1571_v51  ;;  %v1577_v54 = vpop.permute.xlu1 %1576  ;;  %vm3406_vm8 = vcmask 785408  }
 0xa9e   : > { %v1640_v55 = vsel %vm1639_vm14, %v1638_v52, %v1577_v54 }
 0xaa0   : > { %v1583_v57 = vpop.permute.xlu0 %1582 }
 0xaa1   : > { %v1642_v58 = vsel %vm1641_vm2, %v1640_v55, %v1583_v57  ;;  %v1590_v59 = vpop.permute.xlu1 %1589 }
 0xaa2   : > { %v1644_v61 = vsel %vm1643_vm6, %v1642_v58, %v1590_v59 }
 0xaa3   : > { %v1646_v1 = vsel %vm1645_vm12, %v1644_v61, %v1594_v42  ;;  %vm3405_vm12 = vcmask 654336  }
 0xaa4   : > { %v1631_v63 = vpop.permute.xlu0 %1630 }
 0xaa5   : > { %v1657_v0 = vsel %vm1656_vm3, %v1655_v53, %v1631_v63  ;;  %v1601_v2 = vpop.permute.xlu1 %1600 }
 0xaa6   : > { %v1647_v4 = vsel %vm1158_vm13, %v1646_v1, %v1601_v2  ;;  %1884 = vmatprep.mubr.msk.f32.mxu1 %vm1683_vm9, %v1657_v0 }
 0xaa7   : > { %v1649_v6 = vsel %vm1648_vm7, %v1647_v4, %v1607_v44 }
 0xaa8   : > { %1755 = vmatmul.mubr.f32.vlgmr.msra.gmra.mrb[4].mxu1 %v1649_v6 }
 0xb7b   : > { %v1756_v9 = vpop.f32.mrb[4].mxu1 }
 0xb7c   : > { %v1760_v10 = vsub.f32 0.0, %v1756_v9  ;;  %v1758_v11 = vpop.f32.mrb[5].mxu1 }
 0xb7e   : > { %v1761_v12 = vmul.f32 1.442695, %v1760_v10 }
 0xb80   : > { %2331 = vpow2.f32 %v1761_v12 }
 0xb8a   : > { %v2332_v14 = vpop.eup %2331 }
 0xb8b   : > { %v1763_v15 = vadd.f32 1.0, %v2332_v14 }
 0xb8d   : > { %2333 = vrcp.f32 %v1763_v15 }
 0xb97   : > { %v2334_v16 = vpop.eup %2333 }
 0xb98   : > { %1771 = vperm.xlu0 %2320, %v2334_v16   ;;  %1767 = vperm.xlu1 %2319, %v2334_v16  }
 0xb9c   : > { %2323 = vset.pattern.permute.xlu0 %v2368_v13  ;;  %2321 = vset.pattern.permute.xlu1 %v2369_v5 }
 0xb9d   : > { %1783 = vperm.xlu0 %2323, %v2334_v16   ;;  %1775 = vperm.xlu1 %2321, %v2334_v16  }
 0xba1   : > { %2326 = vset.pattern.permute.xlu0 %v2370_v19  ;;  %2322 = vset.pattern.permute.xlu1 %v2371_v20 }
 0xba2   : > { %1795 = vperm.xlu0 %2326, %v2334_v16   ;;  %1779 = vperm.xlu1 %2322, %v2334_v16  }
 0xba6   : > { %2324 = vset.pattern.permute.xlu1 %v2372_v21 }
 0xba7   : > { %1787 = vperm.xlu1 %2324, %v2334_v16  }
 0xbab   : > { %2325 = vset.pattern.permute.xlu1 %v2373_v22 }
 0xbac   : > { %1791 = vperm.xlu1 %2325, %v2334_v16  }
 0xc17   : > { %v1768_v24 = vpop.permute.xlu1 %1767  ;;  %v1772_v26 = vpop.permute.xlu0 %1771 }
 0xc18   : > { %v1798_v28 = vsel %vm414_vm0, %v1768_v24, %v1772_v26 }
 0xc1c   : > { %v1776_v25 = vpop.permute.xlu1 %1775  ;;  %v1784_v29 = vpop.permute.xlu0 %1783 }
 0xc1d   : > { %v1799_v30 = vsel %vm443_vm4, %v1798_v28, %v1776_v25 }
 0xc21   : > { %v1780_v27 = vpop.permute.xlu1 %1779  ;;  %v1796_v3 = vpop.permute.xlu0 %1795 }
 0xc22   : > { %v1800_v32 = vsel %vm1152_vm11, %v1799_v30, %v1780_v27 }
 0xc23   : > { %v1801_v33 = vsel %vm458_vm5, %v1800_v32, %v1784_v29 }
 0xc26   : > { %v1788_v31 = vpop.permute.xlu1 %1787 }
 0xc27   : > { %v1802_v34 = vsel %vm3405_vm12, %v1801_v33, %v1788_v31 }
 0xc2b   : > { %v1792_v35 = vpop.permute.xlu1 %1791 }
 0xc2c   : > { %v1803_v56 = vsel %vm3406_vm8, %v1802_v34, %v1792_v35 }
 0xc2d   : > { %v1804_v36 = vsel %vm1158_vm13, %v1803_v56, %v1796_v3 }
 0xc2e   : > { %v1805_v37 = vmul.f32 %v1804_v36, %v3184_v18 }
 0xc30   : > { %v1806_v38 = vadd.f32 %v1805_v37, %v3180_v17 }
 0xc32   : > { %1807 = vst [vmem:[%s408_s24] sm:$0xff] %v1806_v38 }
 0xc33 PF: > { %s22_s21 = sadd.s32 1, %s2341_s21  }
 0xc34   : > { %p19_p4 = scmp.ge.s32.totalorder %s22_s21, 4  }
 0xc36   :  { %21 = sbr.rel (!%p19_p4) target bundleno = 1 (0x1), region = 98 }

// kernel: rg_forward.5
= control target key start
LH: loop header
LB: loop body
LE: loop exit
PB: predicated region body
PF: predicated region fallthrough
CT: control target
= control target key end

     0   :  { %s719_s15 = smov 0   ;;  %s946_s0 = inlined_call_operand.vmem [shape: f32[2,8,128], index: 0, kind: input, shape index: {}]   ;;  %s947_s1 = inlined_call_operand.vmem [shape: f32[2,8,128], index: 1, kind: input, shape index: {}]   ;;  %s948_s2 = inlined_call_operand.vmem [shape: f32[480,128], index: 2, kind: input, shape index: {}]   ;;  %s949_s3 = inlined_call_operand.vmem [shape: f32[1,128], index: 3, kind: input, shape index: {}]   ;;  %s950_s4 = inlined_call_operand.vmem [shape: f32[2,8,128], index: 4, kind: output, shape index: {}]  }
   0x1 LB: > { %s542_s16 = sadd.s32 4294967295, %s688_s15   ;;  %p546_p0 = scmp.ge.s32.totalorder %s688_s15, 1  ;;  %s688_s15 = sphi %s719_s15, %s14_s15  }
   0x2   : > { %p170_p1 = scmp.lt.s32.totalorder %s688_s15, 3 }
   0x4   : > { %p171_p2 = pnand %p546_p0, %p170_p1 }
   0x5   : > { %p198_p3 = scmp.lt.s32.totalorder (!%p171_p2), %s542_s16, 1  ;;  %v296_v1 = vld [vmem:[%s948_s2 + $0x100] sm:$0xff] (!%p171_p2)  ;;  %s690_s23 = smov (!%p171_p2), 16   ;;  %v691_v2 = vmov (!%p171_p2), 0.0|0.0   ;;  %v297_v3 = vld [vmem:[%s948_s2 + $0x108] sm:$0xff] (!%p171_p2)  ;;  %v298_v4 = vld [vmem:[%s948_s2 + $0x110] sm:$0xff] (!%p171_p2) }
   0x6   : > { %174 = sbr.rel (%p171_p2) target bundleno = 483 (0x1e3), region = 36  ;;  %623 = vmatprep.subr.bf16.mxu1 (!%p171_p2), %v691_v2  ;;  %v299_v5 = vld [vmem:[%s948_s2 + $0x118] sm:$0xff] (!%p171_p2)  ;;  %v624_v6 = vpack.c.bf16 (!%p171_p2), %v297_v3, %v296_v1  ;;  %v300_v8 = vld [vmem:[%s948_s2 + $0x120] sm:$0xff] (!%p171_p2)  ;;  %v301_v9 = vld [vmem:[%s948_s2 + $0x128] sm:$0xff] (!%p171_p2)  ;;  %vm215_vm0 = vcmask (!%p171_p2), 130048   ;;  %vm224_vm1 = vcmask (!%p171_p2), 1040384  }
   0x7   : > { %v627_v7 = vpack.c.bf16 (!%p171_p2), %v299_v5, %v298_v4  ;;  %v280_v10 = vld [vmem:[%s948_s2 + $0x80] sm:$0xff] (!%p171_p2)  ;;  %v281_v11 = vld [vmem:[%s948_s2 + $0x88] sm:$0xff] (!%p171_p2)  ;;  %v282_v16 = vld [vmem:[%s948_s2 + $0x90] sm:$0xff] (!%p171_p2)  ;;  %v630_v20 = vpack.c.bf16 (!%p171_p2), %v301_v9, %v300_v8  ;;  %vm233_vm2 = vcmask (!%p171_p2), 1046528   ;;  %vm248_vm3 = vcmask (!%p171_p2), 1045504   ;;  %s692_s22 = smov (!%p171_p2), 64  }
   0x8   : > { %625 = vmatpush1.bf16.msra.mxu1 (!%p171_p2), %v624_v6  ;;  %v264_v12 = vld [vmem:[%s948_s2] sm:$0xff] (!%p171_p2)  ;;  %v265_v13 = vld [vmem:[%s948_s2 + $0x8] sm:$0xff] (!%p171_p2)  ;;  %v591_v14 = vpack.c.bf16 (!%p171_p2), %v281_v11, %v280_v10  ;;  %v283_v17 = vld [vmem:[%s948_s2 + $0x98] sm:$0xff] (!%p171_p2)  ;;  %vm244_vm4 = vcmask (!%p171_p2), 261120   ;;  %vm259_vm5 = vcmask (!%p171_p2), 523264   ;;  %vm331_vm6 = vcmask (!%p171_p2), 785408  }
   0x9   : > { %626 = vmatprep.subr.bf16.mxu1 (!%p171_p2), %v691_v2  ;;  %v593_v15 = vpack.c.bf16 (!%p171_p2), %v265_v13, %v264_v12  ;;  %v266_v18 = vld [vmem:[%s948_s2 + $0x10] sm:$0xff] (!%p171_p2)  ;;  %v267_v19 = vld [vmem:[%s948_s2 + $0x18] sm:$0xff] (!%p171_p2)  ;;  %v595_v21 = vpack.c.bf16 (!%p171_p2), %v283_v17, %v282_v16  ;;  %v284_v22 = vld [vmem:[%s948_s2 + $0xa0] sm:$0xff] (!%p171_p2) }
   0xa   : > { %592 = vmatprep.subr.bf16.mxu0 (!%p171_p2), %v591_v14  ;;  %v302_v23 = vld [vmem:[%s948_s2 + $0x130] sm:$0xff] (!%p171_p2)  ;;  %v303_v24 = vld [vmem:[%s948_s2 + $0x138] sm:$0xff] (!%p171_p2)  ;;  %v597_v25 = vpack.c.bf16 (!%p171_p2), %v267_v19, %v266_v18  ;;  %v285_v26 = vld [vmem:[%s948_s2 + $0xa8] sm:$0xff] (!%p171_p2) }
   0xb   : > { %594 = vmatpush3.bf16.msra.mxu0 (!%p171_p2), %v593_v15  ;;  %v599_v27 = vpack.c.bf16 (!%p171_p2), %v285_v26, %v284_v22  ;;  %v268_v28 = vld [vmem:[%s948_s2 + $0x20] sm:$0xff] (!%p171_p2)  ;;  %v269_v29 = vld [vmem:[%s948_s2 + $0x28] sm:$0xff] (!%p171_p2)  ;;  %v286_v30 = vld [vmem:[%s948_s2 + $0xb0] sm:$0xff] (!%p171_p2)  ;;  %v633_v32 = vpack.c.bf16 (!%p171_p2), %v303_v24, %v302_v23 }
   0xc   : > { %628 = vmatpush1.bf16.msra.mxu1 (!%p171_p2), %v627_v7  ;;  %596 = vmatprep.subr.bf16.mxu0 (!%p171_p2), %v595_v21  ;;  %v287_v31 = vld [vmem:[%s948_s2 + $0xb8] sm:$0xff] (!%p171_p2)  ;;  %v304_v33 = vld [vmem:[%s948_s2 + $0x140] sm:$0xff] (!%p171_p2)  ;;  %v305_v34 = vld [vmem:[%s948_s2 + $0x148] sm:$0xff] (!%p171_p2)  ;;  %v601_v35 = vpack.c.bf16 (!%p171_p2), %v269_v29, %v268_v28 }
   0xd   : > { %s952_s16 = smov (!%p198_p3, %s542_s16), 1  ;;  %629 = vmatprep.subr.bf16.mxu1 %v691_v2  ;;  %v603_v36 = vpack.c.bf16 %v287_v31, %v286_v30  ;;  %v270_v37 = vld [vmem:[%s948_s2 + $0x30] sm:$0xff]  ;;  %v271_v38 = vld [vmem:[%s948_s2 + $0x38] sm:$0xff]  ;;  %v288_v39 = vld [vmem:[%s948_s2 + $0xc0] sm:$0xff]  ;;  %v636_v41 = vpack.c.bf16 %v305_v34, %v304_v33 }
   0xe   : > { %s727_s17 = sshll.u32 %s952_s16, 3  ;;  %v289_v40 = vld [vmem:[%s948_s2 + $0xc8] sm:$0xff]  ;;  %v306_v42 = vld [vmem:[%s948_s2 + $0x150] sm:$0xff]  ;;  %v307_v43 = vld [vmem:[%s948_s2 + $0x158] sm:$0xff]  ;;  %v605_v44 = vpack.c.bf16 %v271_v38, %v270_v37 }
   0xf   : > { %s201_s20 = scalar_lea.vmem %s946_s0, %s727_s17  ;;  %598 = vmatpush3.bf16.msra.mxu0 %v597_v25  ;;  %v607_v45 = vpack.c.bf16 %v289_v40, %v288_v39  ;;  %v272_v46 = vld [vmem:[%s948_s2 + $0x40] sm:$0xff]  ;;  %v273_v47 = vld [vmem:[%s948_s2 + $0x48] sm:$0xff]  ;;  %v290_v48 = vld [vmem:[%s948_s2 + $0xd0] sm:$0xff]  ;;  %v639_v50 = vpack.c.bf16 %v307_v43, %v306_v42  ;;  %s205_s28 = scalar_lea.vmem %s947_s1, %s727_s17 }
  0x10   : > { %v210_v0 = vld [vmem:[%s201_s20] sm:$0xff]  ;;  %631 = vmatpush1.bf16.msra.mxu1 %v630_v20  ;;  %600 = vmatprep.subr.bf16.mxu0 %v599_v27  ;;  %v291_v49 = vld [vmem:[%s948_s2 + $0xd8] sm:$0xff]  ;;  %v309_v52 = vld [vmem:[%s948_s2 + $0x168] sm:$0xff]  ;;  %v609_v53 = vpack.c.bf16 %v273_v47, %v272_v46  ;;  %s209_s5 = scalar_lea.vmem %s950_s4, %s727_s17 }
  0x11   : > { %212 = vrot.lane.b32.xlu0 %v210_v0, %s690_s23  ;;  %632 = vmatprep.subr.bf16.mxu1 %v691_v2  ;;  %v308_v51 = vld [vmem:[%s948_s2 + $0x160] sm:$0xff]  ;;  %v611_v54 = vpack.c.bf16 %v291_v49, %v290_v48  ;;  %v274_v55 = vld [vmem:[%s948_s2 + $0x50] sm:$0xff]  ;;  %v275_v56 = vld [vmem:[%s948_s2 + $0x58] sm:$0xff]  ;;  %s693_s23 = smov 32  }
  0x12   : > { %v292_v57 = vld [vmem:[%s948_s2 + $0xe0] sm:$0xff]  ;;  %v293_v58 = vld [vmem:[%s948_s2 + $0xe8] sm:$0xff]  ;;  %v642_v59 = vpack.c.bf16 %v309_v52, %v308_v51  ;;  %v310_v60 = vld [vmem:[%s948_s2 + $0x170] sm:$0xff]  ;;  %v613_v62 = vpack.c.bf16 %v275_v56, %v274_v55 }
  0x13   : > { %602 = vmatpush3.bf16.msra.mxu0 %v601_v35  ;;  %v311_v61 = vld [vmem:[%s948_s2 + $0x178] sm:$0xff]  ;;  %v615_v63 = vpack.c.bf16 %v293_v58, %v292_v57  ;;  %v276_v0 = vld [vmem:[%s948_s2 + $0x60] sm:$0xff]  ;;  %v277_v1 = vld [vmem:[%s948_s2 + $0x68] sm:$0xff] }
  0x14   : > { %634 = vmatpush1.bf16.msra.mxu1 %v633_v32  ;;  %604 = vmatprep.subr.bf16.mxu0 %v603_v36  ;;  %v645_v3 = vpack.c.bf16 %v311_v61, %v310_v60  ;;  %v312_v4 = vld [vmem:[%s948_s2 + $0x180] sm:$0xff]  ;;  %v313_v5 = vld [vmem:[%s948_s2 + $0x188] sm:$0xff]  ;;  %v617_v6 = vpack.c.bf16 %v277_v1, %v276_v0  ;;  %v314_v8 = vld [vmem:[%s948_s2 + $0x190] sm:$0xff] }
  0x15   : > { %635 = vmatprep.subr.bf16.mxu1 %v691_v2  ;;  %v648_v7 = vpack.c.bf16 %v313_v5, %v312_v4  ;;  %v315_v9 = vld [vmem:[%s948_s2 + $0x198] sm:$0xff]  ;;  %v316_v11 = vld [vmem:[%s948_s2 + $0x1a0] sm:$0xff]  ;;  %v317_v12 = vld [vmem:[%s948_s2 + $0x1a8] sm:$0xff] }
  0x16   : > { %v651_v10 = vpack.c.bf16 %v315_v9, %v314_v8  ;;  %v654_v13 = vpack.c.bf16 %v317_v12, %v316_v11  ;;  %v318_v14 = vld [vmem:[%s948_s2 + $0x1b0] sm:$0xff]  ;;  %v319_v15 = vld [vmem:[%s948_s2 + $0x1b8] sm:$0xff]  ;;  %v320_v17 = vld [vmem:[%s948_s2 + $0x1c0] sm:$0xff] }
  0x17   : > { %606 = vmatpush3.bf16.msra.mxu0 %v605_v44  ;;  %v657_v16 = vpack.c.bf16 %v319_v15, %v318_v14  ;;  %v321_v18 = vld [vmem:[%s948_s2 + $0x1c8] sm:$0xff]  ;;  %v294_v20 = vld [vmem:[%s948_s2 + $0xf0] sm:$0xff]  ;;  %v295_v21 = vld [vmem:[%s948_s2 + $0xf8] sm:$0xff] }
  0x18   : > { %637 = vmatpush1.bf16.msra.mxu1 %v636_v41  ;;  %608 = vmatprep.subr.bf16.mxu0 %v607_v45  ;;  %v660_v19 = vpack.c.bf16 %v321_v18, %v320_v17  ;;  %v619_v22 = vpack.c.bf16 %v295_v21, %v294_v20  ;;  %v278_v23 = vld [vmem:[%s948_s2 + $0x70] sm:$0xff]  ;;  %v279_v24 = vld [vmem:[%s948_s2 + $0x78] sm:$0xff]  ;;  %vm551_vm7 = vmneg %vm224_vm1 }
  0x19   : > { %638 = vmatprep.subr.bf16.mxu1 %v691_v2  ;;  %v621_v25 = vpack.c.bf16 %v279_v24, %v278_v23  ;;  %v323_v26 = vld [vmem:[%s948_s2 + $0x1d8] sm:$0xff]  ;;  %v550_v61 = vld [vmem:[%s949_s3] ss:$0 sm:$0xff] }
  0x1b   : > { %610 = vmatpush3.bf16.msra.mxu0 %v609_v53 }
  0x1c   : > { %640 = vmatpush1.bf16.msra.mxu1 %v639_v50  ;;  %612 = vmatprep.subr.bf16.mxu0 %v611_v54 }
  0x1d   : > { %641 = vmatprep.subr.bf16.mxu1 %v691_v2 }
  0x1f   : > { %614 = vmatpush3.bf16.msra.mxu0 %v613_v62 }
  0x20   : > { %643 = vmatpush1.bf16.msra.mxu1 %v642_v59  ;;  %616 = vmatprep.subr.bf16.mxu0 %v615_v63 }
  0x21   : > { %644 = vmatprep.subr.bf16.mxu1 %v691_v2 }
  0x23   : > { %618 = vmatpush3.bf16.msra.mxu0 %v617_v6 }
  0x24   : > { %646 = vmatpush1.bf16.msra.mxu1 %v645_v3  ;;  %620 = vmatprep.subr.bf16.mxu0 %v619_v22  ;;  %v474_v3 = vld [vmem:[%s205_s28] sm:$0xff] }
  0x25   : > { %647 = vmatprep.subr.bf16.mxu1 %v691_v2 }
  0x27   : > { %622 = vmatpush3.bf16.msra.mxu0 %v621_v25 }
  0x28   : > { %649 = vmatpush1.bf16.msra.mxu1 %v648_v7 }
  0x29   : > { %650 = vmatprep.subr.bf16.mxu1 %v691_v2 }
  0x2c   : > { %652 = vmatpush1.bf16.msra.mxu1 %v651_v10 }
  0x2d   : > { %653 = vmatprep.subr.bf16.mxu1 %v691_v2 }
  0x30   : > { %655 = vmatpush1.bf16.msra.mxu1 %v654_v13 }
  0x31   : > { %656 = vmatprep.subr.bf16.mxu1 %v691_v2 }
  0x34   : > { %658 = vmatpush1.bf16.msra.mxu1 %v657_v16 }
  0x35   : > { %659 = vmatprep.subr.bf16.mxu1 %v691_v2 }
  0x38   : > { %661 = vmatpush1.bf16.msra.mxu1 %v660_v19 }
  0x39   : > { %662 = vmatprep.subr.bf16.mxu1 %v691_v2  ;;  %v322_v2 = vld [vmem:[%s948_s2 + $0x1d0] sm:$0xff] }
  0x3a   : > { %v663_v27 = vpack.c.bf16 %v323_v26, %v322_v2 }
  0x3c   : > { %664 = vmatpush1.bf16.msra.mxu1 %v663_v27 }
  0x83   : > { %v213_v28 = vpop.permute.xlu0 %212 }
  0x84   : > { %v216_v29 = vsel %vm215_vm0, 0.0, %v213_v28  ;;  %v217_v30 = vsel %vm215_vm0, %v213_v28, 0.0 }
  0x85   : > { %v220_v31 = vrot.slane %v216_v29, 7  ;;  %v221_v32 = vrot.slane %v217_v30, 7 }
  0x87   : > { %v226_v33 = vsel %vm224_vm1, 0.0, %v221_v32  ;;  %v228_v34 = vsel %vm224_vm1, %v221_v32, 0.0  ;;  %v225_v35 = vsel %vm224_vm1, 0.0, %v220_v31  ;;  %v227_v36 = vsel %vm224_vm1, %v220_v31, 0.0 }
  0x88   : > { %v237_v37 = vrot.slane %v226_v33, 1  ;;  %v238_v38 = vrot.slane %v228_v34, 1  ;;  %v235_v39 = vrot.slane %v227_v36, 1  ;;  %v249_v40 = vrot.slane %v225_v35, 2 }
  0x89   : > { %v250_v41 = vrot.slane %v227_v36, 2  ;;  %v234_v42 = vrot.slane %v225_v35, 1  ;;  %v253_v44 = vrot.slane %v228_v34, 2  ;;  %v252_v47 = vrot.slane %v226_v33, 2 }
  0x8a   : > { %v239_v43 = vsel %vm233_vm2, %v237_v37, %v238_v38 }
  0x8b   : > { %v251_v45 = vsel %vm248_vm3, %v249_v40, %v250_v41  ;;  %v236_v46 = vsel %vm233_vm2, %v234_v42, %v235_v39  ;;  %v254_v49 = vsel %vm248_vm3, %v252_v47, %v253_v44 }
  0x8c   : > { %255 = vrot.lane.b32.xlu1 %v251_v45, %s692_s22  ;;  %v677_v48 = vpack.i.bf16 %v239_v43, %v236_v46 }
  0x8e   : > { %678 = vrot.lane.b32.xlu0 %v677_v48, %s693_s23 }
  0x90   : > { %257 = vrot.lane.b32.xlu1 %v254_v49, %s692_s22 }
  0xfe   : > { %v256_v50 = vpop.permute.xlu1 %255 }
 0x100   : > { %v679_v51 = vpop.permute.xlu0 %678 }
 0x101   : > { %v681_v52 = vunpack.i.h.bf16 %v679_v51  ;;  %v680_v53 = vunpack.i.l.bf16 %v679_v51 }
 0x102   : > { %v258_v54 = vpop.permute.xlu1 %257 }
 0x103   : > { %v262_v55 = vsel %vm244_vm4, %v226_v33, %v680_v53  ;;  %v260_v56 = vsel %vm259_vm5, %v256_v50, %v258_v54  ;;  %v245_v57 = vsel %vm244_vm4, %v680_v53, %v681_v52 }
 0x104   : > { %398 = vmatprep.mubr.f32.mxu0 %v262_v55  ;;  %553 = vmatprep.mubr.msk.f32.mxu1 %vm331_vm6, %v260_v56  ;;  %v263_v58 = vsel %vm259_vm5, %v245_v57, %v256_v50 }
 0x105   : > { %552 = vmatmul.mubr.msk.f32.vlgmr.msra.gmra.mrb[0].mxu0 %vm551_vm7, %v220_v31  ;;  %469 = vmatmul.mubr.f32.vlgmr.msra.gmra.mrb[0].mxu1 %v263_v58 }
 0x1d8   : > { %v588_v59 = vpop.f32.mrb[0].mxu0  ;;  %v470_v60 = vpop.f32.mrb[0].mxu1 }
 0x1d9   : > { %v589_v62 = vpop.f32.mrb[1].mxu0  ;;  %v472_v63 = vpop.f32.mrb[1].mxu1 }
 0x1da   : > { %v590_v0 = vadd.f32 %v589_v62, %v588_v59 }
 0x1dc   : > { %v401_v1 = vadd.f32 %v590_v0, %v550_v61 }
 0x1de   : > { %v471_v4 = vadd.f32 %v470_v60, %v401_v1 }
 0x1e0   : > { %v475_v5 = vadd.f32 %v474_v3, %v471_v4 }
 0x1e2   : > { %476 = vst [vmem:[%s209_s5] sm:$0xff] %v475_v5 }
 0x1e3 PF: > { %s14_s15 = sadd.s32 1, %s688_s15  }
 0x1e4   : > { %p11_p4 = scmp.ge.s32.totalorder %s14_s15, 4  }
 0x1e6   :  { %13 = sbr.rel (!%p11_p4) target bundleno = 1 (0x1), region = 69 }

</bundles_post_ra>
